<compile_context>
chip_gen: v6e
topology: v6e:2x2x1
jax: 0.10.0
libtpu: 0.0.40
codegen_flags: <defaults>
</compile_context>

<pallas_src>
import functools

import jax
import jax.numpy as jnp
from jax.experimental import pallas as pl
from jax.experimental.pallas import tpu as pltpu


B_SUB = 8              # pad batch to a full sublane group
LANES = 128            # lane width: gate blocks / FC output padded to multiples of this
WDT = jnp.bfloat16     # MXU operand dtype (accumulation stays f32)


def _round_up(n, m):
    return (n + m - 1) // m * m


# ---------------------------------------------------------------------------
# Pallas kernel: full 2-layer LSTM forward + final Linear, all inside one kernel.
# PyTorch nn.LSTM gate order: [i, f, g, o].
# ---------------------------------------------------------------------------
def _lstm_fc_kernel(x_ref,      # (T*Bp, I)   bf16  time-major, batch-padded, flattened
                    wih0_ref,   # (I,  4*GB)  bf16  layer-0 input weights, gate-blocked
                    whh0_ref,   # (H,  4*GB)  bf16  layer-0 recurrent weights (K = H)
                    b0_ref,     # (1,  4*GB)  f32   bih0 + bhh0, pre-summed
                    wih1_ref,   # (H,  4*GB)  bf16  layer-1 input weights
                    whh1_ref,   # (H,  4*GB)  bf16  layer-1 recurrent weights
                    b1_ref,     # (1,  4*GB)  f32   bih1 + bhh1, pre-summed
                    wfc_ref,    # (H,  Op)    bf16
                    bfc_ref,    # (1,  Op)    f32
                    out_ref):   # (Bp, Op)    f32
    f32 = jnp.float32
    TB = x_ref.shape[0]
    H = whh0_ref.shape[0]
    GB = whh0_ref.shape[1] // 4          # per-gate lane block (multiple of 128)
    Bp = out_ref.shape[0]
    T = TB // Bp

    # Weights loaded once; the per-step layer-1 bias broadcast is hoisted (JAX does not
    # CSE broadcast_in_dim inside the unrolled loop).
    whh0 = whh0_ref[...]
    wih1 = wih1_ref[...]
    whh1 = whh1_ref[...]
    b1 = jnp.broadcast_to(b1_ref[...], (Bp, 4 * GB))

    # Layer-0 input projection is independent of the recurrence -> hoisted out of the
    # serial time loop.  The t=0 block is a separate matmul so the recurrent chain can
    # start while the remaining (T-1)*Bp rows are still being projected.
    gi0_head = jnp.dot(x_ref[0:Bp, :], wih0_ref[...],
                       preferred_element_type=f32) + b0_ref[...]
    if T > 1:
        gi0_tail = jnp.dot(x_ref[Bp:, :], wih0_ref[...],
                           preferred_element_type=f32) + b0_ref[...]

    def lstm_update(gates, c_prev):
        # Every gate sits at a tile-aligned (multiple-of-128) lane offset and is sliced
        # down to its real H lanes, so all state elementwise math runs on (Bp, H) vregs.
        i = jax.nn.sigmoid(gates[:, 0 * GB:0 * GB + H])
        f = jax.nn.sigmoid(gates[:, 1 * GB:1 * GB + H])
        g = jnp.tanh(gates[:, 2 * GB:2 * GB + H])
        o = jax.nn.sigmoid(gates[:, 3 * GB:3 * GB + H])
        c = f * c_prev + i * g
        h = o * jnp.tanh(c)
        return h, c

    h0 = jnp.zeros((Bp, H), f32)
    c0 = jnp.zeros((Bp, H), f32)
    h1 = jnp.zeros((Bp, H), f32)
    c1 = jnp.zeros((Bp, H), f32)
    rec1 = jnp.zeros((Bp, 4 * GB), f32)   # h1(t-1) @ whh1, computed eagerly off-chain

    # T is static & small: fully unrolled; static sublane-aligned slices of gi0_tail.
    for t in range(T):
        gi0_t = gi0_head if t == 0 else gi0_tail[(t - 1) * Bp:t * Bp, :]

        # layer 0: only the (Bp,H) @ (H,4GB) recurrent matmul sits on the serial chain.
        gates0 = gi0_t + jnp.dot(h0.astype(WDT), whh0, preferred_element_type=f32)
        h0, c0 = lstm_update(gates0, c0)

        # layer 1: h1(t-1) @ whh1 (rec1) was issued right after h1(t-1) was produced, so
        # only h0(t) @ wih1 remains on the h0-dependent path.
        gates1 = jnp.dot(h0.astype(WDT), wih1, preferred_element_type=f32) + rec1 + b1
        h1, c1 = lstm_update(gates1, c1)
        if t + 1 < T:
            rec1 = jnp.dot(h1.astype(WDT), whh1, preferred_element_type=f32)

    # fc(out[:, -1, :]) — last timestep of the top layer; lane-dense (Bp, Op) store.
    out_ref[...] = (jnp.dot(h1.astype(WDT), wfc_ref[...], preferred_element_type=f32)
                    + bfc_ref[...])


# ---------------------------------------------------------------------------
# One-time weight packing (NOT per forward call).
# ---------------------------------------------------------------------------
def _pad_gate_cols(w, H, GB):
    """(Din, 4*H) -> (Din, 4*GB): each gate's H columns placed at the start of its own
    tile-aligned GB-lane block (zeros elsewhere)."""
    Din = w.shape[0]
    w4 = w.reshape(Din, 4, H)
    return jnp.zeros((Din, 4, GB), w.dtype).at[:, :, :H].set(w4).reshape(Din, 4 * GB)


def pack_params(params):
    """Repack nn.LSTM / nn.Linear parameters into the kernel layout, once at init:
    bf16 matmul weights (f32 biases, pre-summed), gate-blocked 128-lane columns,
    UNPADDED contraction (K = H) rows, FC output columns padded for a lane-dense store.
    Padded gate/output lanes are never read back (h is sliced to [:, :H]), so the zero
    padding is inert by construction."""
    H = params["whh0"].shape[0]
    O = params["wfc"].shape[1]
    GB = _round_up(H, LANES)
    Op = _round_up(O, LANES)
    f32 = jnp.float32
    return {
        "wih0": _pad_gate_cols(params["wih0"], H, GB).astype(WDT),              # (I, 4GB)
        "whh0": _pad_gate_cols(params["whh0"], H, GB).astype(WDT),              # (H, 4GB)
        "b0":   _pad_gate_cols(params["bih0"] + params["bhh0"], H, GB).astype(f32),
        "wih1": _pad_gate_cols(params["wih1"], H, GB).astype(WDT),              # (H, 4GB)
        "whh1": _pad_gate_cols(params["whh1"], H, GB).astype(WDT),              # (H, 4GB)
        "b1":   _pad_gate_cols(params["bih1"] + params["bhh1"], H, GB).astype(f32),
        "wfc":  jnp.zeros((H, Op), f32).at[:, :O].set(params["wfc"]).astype(WDT),
        "bfc":  jnp.zeros((1, Op), f32).at[:, :O].set(params["bfc"]),
    }


# ---------------------------------------------------------------------------
# Per-call wrapper: activation plumbing only + pallas_call.
# ---------------------------------------------------------------------------
def _squeeze_to_bti(x):
    """Mirror the torch module's x.squeeze() -> (B, T, input_size), but drop the known
    singleton channel axis first so a batch (or seq) of 1 does not collapse."""
    if x.ndim == 4 and x.shape[1] == 1:
        x = x[:, 0]
    elif x.ndim != 3:
        x = jnp.squeeze(x)
    assert x.ndim == 3, f"expected (B, T, input_size) after squeeze, got {x.shape}"
    return x


@functools.partial(jax.jit, static_argnames=("out_size",))
def rnn_lstm_forward(x, packed, *, out_size):
    """x: raw module input (squeezes to (B, T, input_size), batch_first).
    packed: pack_params(...) output, built once and reused across calls.
    Returns (B, out_size) float32."""
    xs = _squeeze_to_bti(x)
    B, T, I = xs.shape
    Bp = _round_up(B, B_SUB)              # pad batch to a full sublane group

    # Per-call work: batch-pad, go time-major, flatten, cast the MXU operand to bf16.
    x_p = jnp.zeros((Bp, T, I), WDT).at[:B].set(xs.astype(WDT))
    x_tb = jnp.transpose(x_p, (1, 0, 2)).reshape(T * Bp, I)

    Op = packed["wfc"].shape[1]
    vmem = pl.BlockSpec(memory_space=pltpu.MemorySpace.VMEM)
    out_p = pl.pallas_call(
        _lstm_fc_kernel,
        out_shape=jax.ShapeDtypeStruct((Bp, Op), jnp.float32),
        in_specs=[vmem] * 9,
        out_specs=vmem,
    )(x_tb, packed["wih0"], packed["whh0"], packed["b0"],
      packed["wih1"], packed["whh1"], packed["b1"],
      packed["wfc"], packed["bfc"])
    # TODO(synk): if T/B ever grow, add a T-grid (h/c carried in VMEM scratch) plus a
    # "parallel" batch-tile axis sized against v7x's 64 MiB VMEM so its two TensorCores
    # split the batch; at B=2/T=8 a grid only adds ~0.35us/step of overhead.
    return out_p[:B, :out_size]


# ---------------------------------------------------------------------------
# Deterministic parameter init (mirrors nn.LSTM / nn.Linear shapes; uniform init).
# Weights stored pre-transposed for right-multiplication; gate order [i, f, g, o].
# ---------------------------------------------------------------------------
def init_params(key, input_size, hidden_size, output_size):
    H = hidden_size
    bound = 1.0 / jnp.sqrt(jnp.float32(H))
    ks = jax.random.split(key, 10)

    def u(k, shape):
        return jax.random.uniform(k, shape, jnp.float32, -bound, bound)

    return {
        "wih0": u(ks[0], (input_size, 4 * H)),
        "whh0": u(ks[1], (H, 4 * H)),
        "bih0": u(ks[2], (1, 4 * H)),
        "bhh0": u(ks[3], (1, 4 * H)),
        "wih1": u(ks[4], (H, 4 * H)),
        "whh1": u(ks[5], (H, 4 * H)),
        "bih1": u(ks[6], (1, 4 * H)),
        "bhh1": u(ks[7], (1, 4 * H)),
        "wfc":  u(ks[8], (H, output_size)),
        "bfc":  u(ks[9], (1, output_size)),
    }


# ---------------------------------------------------------------------------
# Pure-JAX f32 reference (same LSTM math, unpadded) for a correctness check.
# ---------------------------------------------------------------------------
def reference_forward(x, params):
    xs = _squeeze_to_bti(x)
    B, T, I = xs.shape
    H = params["whh0"].shape[0]

    def cell(x_t, h, c, wih, whh, bih, bhh):
        gates = x_t @ wih + bih + h @ whh + bhh
        i = jax.nn.sigmoid(gates[:, 0 * H:1 * H])
        f = jax.nn.sigmoid(gates[:, 1 * H:2 * H])
        g = jnp.tanh(gates[:, 2 * H:3 * H])
        o = jax.nn.sigmoid(gates[:, 3 * H:4 * H])
        c = f * c + i * g
        h = o * jnp.tanh(c)
        return h, c

    h0 = c0 = jnp.zeros((B, H), jnp.float32)
    h1 = c1 = jnp.zeros((B, H), jnp.float32)
    for t in range(T):
        h0, c0 = cell(xs[:, t, :], h0, c0,
                      params["wih0"], params["whh0"], params["bih0"], params["bhh0"])
        h1, c1 = cell(h0, h1, c1,
                      params["wih1"], params["whh1"], params["bih1"], params["bhh1"])
    return h1 @ params["wfc"] + params["bfc"]


if __name__ == "__main__":
    B, T, I, H, O = 2, 8, 16, 32, 10

    key = jax.random.PRNGKey(0)
    k_x, k_p = jax.random.split(key)
    # Raw module input is (B, 1, T, I); forward() squeezes it to (B, T, I).
    x = jax.random.normal(k_x, (B, 1, T, I), jnp.float32)
    params = init_params(k_p, I, H, O)
    packed = pack_params(params)          # one-time weight repack (reused across calls)

    out = rnn_lstm_forward(x, packed, out_size=O)
    out = jax.block_until_ready(out)

    ref = reference_forward(x, params)
    assert out.shape == (B, O)
    # Kernel matmuls use bf16 operands (f32 accumulate / gate math); the reference is
    # pure f32, so compare with a bf16-appropriate tolerance.
    assert jnp.allclose(out, ref, atol=3e-2, rtol=3e-2), "Pallas output mismatch vs reference"

    print("KERNEL_OK")
</pallas_src>

<mosaic_0001>
module attributes {stable_mosaic.version = 11 : i64} {
  func.func @_lstm_fc_kernel(%arg0: memref<64x16xbf16, #tpu.memory_space<vmem>>, %arg1: memref<16x512xbf16, #tpu.memory_space<vmem>>, %arg2: memref<32x512xbf16, #tpu.memory_space<vmem>>, %arg3: memref<1x512xf32, #tpu.memory_space<vmem>>, %arg4: memref<32x512xbf16, #tpu.memory_space<vmem>>, %arg5: memref<32x512xbf16, #tpu.memory_space<vmem>>, %arg6: memref<1x512xf32, #tpu.memory_space<vmem>>, %arg7: memref<32x128xbf16, #tpu.memory_space<vmem>>, %arg8: memref<1x128xf32, #tpu.memory_space<vmem>>, %arg9: memref<8x128xf32, #tpu.memory_space<vmem>>) attributes {dimension_semantics = [], scalar_prefetch = 0 : i64, scratch_operands = 0 : i64, tpu.core_type = #tpu.core_type<tc>} {
    %c0 = arith.constant 0 : index
    %c0_0 = arith.constant 0 : index
    %0 = vector.load %arg2[%c0, %c0_0] : memref<32x512xbf16, #tpu.memory_space<vmem>>, vector<32x512xbf16>
    %c0_1 = arith.constant 0 : index
    %c0_2 = arith.constant 0 : index
    %1 = vector.load %arg4[%c0_1, %c0_2] : memref<32x512xbf16, #tpu.memory_space<vmem>>, vector<32x512xbf16>
    %c0_3 = arith.constant 0 : index
    %c0_4 = arith.constant 0 : index
    %2 = vector.load %arg5[%c0_3, %c0_4] : memref<32x512xbf16, #tpu.memory_space<vmem>>, vector<32x512xbf16>
    %c0_5 = arith.constant 0 : index
    %c0_6 = arith.constant 0 : index
    %3 = vector.load %arg6[%c0_5, %c0_6] : memref<1x512xf32, #tpu.memory_space<vmem>>, vector<1x512xf32>
    %4 = vector.shape_cast %3 : vector<1x512xf32> to vector<1x512xf32>
    %5 = vector.broadcast %4 : vector<1x512xf32> to vector<8x512xf32>
    %c0_7 = arith.constant 0 : index
    %c0_8 = arith.constant 0 : index
    %6 = vector.load %arg0[%c0_7, %c0_8] : memref<64x16xbf16, #tpu.memory_space<vmem>>, vector<8x16xbf16>
    %c0_9 = arith.constant 0 : index
    %c0_10 = arith.constant 0 : index
    %7 = vector.load %arg1[%c0_9, %c0_10] : memref<16x512xbf16, #tpu.memory_space<vmem>>, vector<16x512xbf16>
    %cst = arith.constant dense<0.000000e+00> : vector<8x512xf32>
    %8 = tpu.matmul %6, %7, %cst {dimension_numbers = #tpu.dot_dimension_numbers<[1], [0], [0], [1], [0, 0, 1, 1], [], []>} : vector<8x16xbf16>, vector<16x512xbf16>, vector<8x512xf32> -> vector<8x512xf32>
    %c0_11 = arith.constant 0 : index
    %c0_12 = arith.constant 0 : index
    %9 = vector.load %arg3[%c0_11, %c0_12] : memref<1x512xf32, #tpu.memory_space<vmem>>, vector<1x512xf32>
    %10 = vector.broadcast %9 : vector<1x512xf32> to vector<8x512xf32>
    %11 = arith.addf %8, %10 : vector<8x512xf32>
    %c8 = arith.constant 8 : index
    %c0_13 = arith.constant 0 : index
    %12 = vector.load %arg0[%c8, %c0_13] : memref<64x16xbf16, #tpu.memory_space<vmem>>, vector<56x16xbf16>
    %c0_14 = arith.constant 0 : index
    %c0_15 = arith.constant 0 : index
    %13 = vector.load %arg1[%c0_14, %c0_15] : memref<16x512xbf16, #tpu.memory_space<vmem>>, vector<16x512xbf16>
    %cst_16 = arith.constant dense<0.000000e+00> : vector<56x512xf32>
    %14 = tpu.matmul %12, %13, %cst_16 {dimension_numbers = #tpu.dot_dimension_numbers<[1], [0], [0], [1], [0, 0, 1, 1], [], []>} : vector<56x16xbf16>, vector<16x512xbf16>, vector<56x512xf32> -> vector<56x512xf32>
    %c0_17 = arith.constant 0 : index
    %c0_18 = arith.constant 0 : index
    %15 = vector.load %arg3[%c0_17, %c0_18] : memref<1x512xf32, #tpu.memory_space<vmem>>, vector<1x512xf32>
    %16 = vector.broadcast %15 : vector<1x512xf32> to vector<56x512xf32>
    %17 = arith.addf %14, %16 : vector<56x512xf32>
    %cst_19 = arith.constant 0.000000e+00 : f32
    %18 = vector.broadcast %cst_19 : f32 to vector<8x32xf32>
    %cst_20 = arith.constant 0.000000e+00 : f32
    %19 = vector.broadcast %cst_20 : f32 to vector<8x32xf32>
    %cst_21 = arith.constant 0.000000e+00 : f32
    %20 = vector.broadcast %cst_21 : f32 to vector<8x32xf32>
    %cst_22 = arith.constant 0.000000e+00 : f32
    %21 = vector.broadcast %cst_22 : f32 to vector<8x512xf32>
    %22 = arith.truncf %18 : vector<8x32xf32> to vector<8x32xbf16>
    %cst_23 = arith.constant dense<0.000000e+00> : vector<8x512xf32>
    %23 = tpu.matmul %22, %0, %cst_23 {dimension_numbers = #tpu.dot_dimension_numbers<[1], [0], [0], [1], [0, 0, 1, 1], [], []>} : vector<8x32xbf16>, vector<32x512xbf16>, vector<8x512xf32> -> vector<8x512xf32>
    %24 = arith.addf %11, %23 : vector<8x512xf32>
    %25 = vector.extract_strided_slice %24 {offsets = [0, 0], sizes = [8, 32], strides = [1, 1]} : vector<8x512xf32> to vector<8x32xf32>
    %26 = arith.negf %25 : vector<8x32xf32>
    %27 = math.exp %26 : vector<8x32xf32>
    %cst_24 = arith.constant 1.000000e+00 : f32
    %28 = vector.broadcast %cst_24 : f32 to vector<8x32xf32>
    %29 = arith.addf %28, %27 : vector<8x32xf32>
    %30 = arith.divf %28, %29 : vector<8x32xf32>
    %31 = vector.extract_strided_slice %24 {offsets = [0, 128], sizes = [8, 32], strides = [1, 1]} : vector<8x512xf32> to vector<8x32xf32>
    %32 = arith.negf %31 : vector<8x32xf32>
    %33 = math.exp %32 : vector<8x32xf32>
    %cst_25 = arith.constant 1.000000e+00 : f32
    %34 = vector.broadcast %cst_25 : f32 to vector<8x32xf32>
    %35 = arith.addf %34, %33 : vector<8x32xf32>
    %36 = arith.divf %34, %35 : vector<8x32xf32>
    %37 = vector.extract_strided_slice %24 {offsets = [0, 256], sizes = [8, 32], strides = [1, 1]} : vector<8x512xf32> to vector<8x32xf32>
    %38 = math.tanh %37 : vector<8x32xf32>
    %39 = vector.extract_strided_slice %24 {offsets = [0, 384], sizes = [8, 32], strides = [1, 1]} : vector<8x512xf32> to vector<8x32xf32>
    %40 = arith.negf %39 : vector<8x32xf32>
    %41 = math.exp %40 : vector<8x32xf32>
    %cst_26 = arith.constant 1.000000e+00 : f32
    %42 = vector.broadcast %cst_26 : f32 to vector<8x32xf32>
    %43 = arith.addf %42, %41 : vector<8x32xf32>
    %44 = arith.divf %42, %43 : vector<8x32xf32>
    %45 = arith.mulf %36, %19 : vector<8x32xf32>
    %46 = arith.mulf %30, %38 : vector<8x32xf32>
    %47 = arith.addf %45, %46 : vector<8x32xf32>
    %48 = math.tanh %47 : vector<8x32xf32>
    %49 = arith.mulf %44, %48 : vector<8x32xf32>
    %50 = arith.truncf %49 : vector<8x32xf32> to vector<8x32xbf16>
    %cst_27 = arith.constant dense<0.000000e+00> : vector<8x512xf32>
    %51 = tpu.matmul %50, %1, %cst_27 {dimension_numbers = #tpu.dot_dimension_numbers<[1], [0], [0], [1], [0, 0, 1, 1], [], []>} : vector<8x32xbf16>, vector<32x512xbf16>, vector<8x512xf32> -> vector<8x512xf32>
    %52 = arith.addf %51, %21 : vector<8x512xf32>
    %53 = arith.addf %52, %5 : vector<8x512xf32>
    %54 = vector.extract_strided_slice %53 {offsets = [0, 0], sizes = [8, 32], strides = [1, 1]} : vector<8x512xf32> to vector<8x32xf32>
    %55 = arith.negf %54 : vector<8x32xf32>
    %56 = math.exp %55 : vector<8x32xf32>
    %cst_28 = arith.constant 1.000000e+00 : f32
    %57 = vector.broadcast %cst_28 : f32 to vector<8x32xf32>
    %58 = arith.addf %57, %56 : vector<8x32xf32>
    %59 = arith.divf %57, %58 : vector<8x32xf32>
    %60 = vector.extract_strided_slice %53 {offsets = [0, 128], sizes = [8, 32], strides = [1, 1]} : vector<8x512xf32> to vector<8x32xf32>
    %61 = arith.negf %60 : vector<8x32xf32>
    %62 = math.exp %61 : vector<8x32xf32>
    %cst_29 = arith.constant 1.000000e+00 : f32
    %63 = vector.broadcast %cst_29 : f32 to vector<8x32xf32>
    %64 = arith.addf %63, %62 : vector<8x32xf32>
    %65 = arith.divf %63, %64 : vector<8x32xf32>
    %66 = vector.extract_strided_slice %53 {offsets = [0, 256], sizes = [8, 32], strides = [1, 1]} : vector<8x512xf32> to vector<8x32xf32>
    %67 = math.tanh %66 : vector<8x32xf32>
    %68 = vector.extract_strided_slice %53 {offsets = [0, 384], sizes = [8, 32], strides = [1, 1]} : vector<8x512xf32> to vector<8x32xf32>
    %69 = arith.negf %68 : vector<8x32xf32>
    %70 = math.exp %69 : vector<8x32xf32>
    %cst_30 = arith.constant 1.000000e+00 : f32
    %71 = vector.broadcast %cst_30 : f32 to vector<8x32xf32>
    %72 = arith.addf %71, %70 : vector<8x32xf32>
    %73 = arith.divf %71, %72 : vector<8x32xf32>
    %74 = arith.mulf %65, %20 : vector<8x32xf32>
    %75 = arith.mulf %59, %67 : vector<8x32xf32>
    %76 = arith.addf %74, %75 : vector<8x32xf32>
    %77 = math.tanh %76 : vector<8x32xf32>
    %78 = arith.mulf %73, %77 : vector<8x32xf32>
    %79 = arith.truncf %78 : vector<8x32xf32> to vector<8x32xbf16>
    %cst_31 = arith.constant dense<0.000000e+00> : vector<8x512xf32>
    %80 = tpu.matmul %79, %2, %cst_31 {dimension_numbers = #tpu.dot_dimension_numbers<[1], [0], [0], [1], [0, 0, 1, 1], [], []>} : vector<8x32xbf16>, vector<32x512xbf16>, vector<8x512xf32> -> vector<8x512xf32>
    %81 = vector.extract_strided_slice %17 {offsets = [0, 0], sizes = [8, 512], strides = [1, 1]} : vector<56x512xf32> to vector<8x512xf32>
    %82 = arith.truncf %49 : vector<8x32xf32> to vector<8x32xbf16>
    %cst_32 = arith.constant dense<0.000000e+00> : vector<8x512xf32>
    %83 = tpu.matmul %82, %0, %cst_32 {dimension_numbers = #tpu.dot_dimension_numbers<[1], [0], [0], [1], [0, 0, 1, 1], [], []>} : vector<8x32xbf16>, vector<32x512xbf16>, vector<8x512xf32> -> vector<8x512xf32>
    %84 = arith.addf %81, %83 : vector<8x512xf32>
    %85 = vector.extract_strided_slice %84 {offsets = [0, 0], sizes = [8, 32], strides = [1, 1]} : vector<8x512xf32> to vector<8x32xf32>
    %86 = arith.negf %85 : vector<8x32xf32>
    %87 = math.exp %86 : vector<8x32xf32>
    %cst_33 = arith.constant 1.000000e+00 : f32
    %88 = vector.broadcast %cst_33 : f32 to vector<8x32xf32>
    %89 = arith.addf %88, %87 : vector<8x32xf32>
    %90 = arith.divf %88, %89 : vector<8x32xf32>
    %91 = vector.extract_strided_slice %84 {offsets = [0, 128], sizes = [8, 32], strides = [1, 1]} : vector<8x512xf32> to vector<8x32xf32>
    %92 = arith.negf %91 : vector<8x32xf32>
    %93 = math.exp %92 : vector<8x32xf32>
    %cst_34 = arith.constant 1.000000e+00 : f32
    %94 = vector.broadcast %cst_34 : f32 to vector<8x32xf32>
    %95 = arith.addf %94, %93 : vector<8x32xf32>
    %96 = arith.divf %94, %95 : vector<8x32xf32>
    %97 = vector.extract_strided_slice %84 {offsets = [0, 256], sizes = [8, 32], strides = [1, 1]} : vector<8x512xf32> to vector<8x32xf32>
    %98 = math.tanh %97 : vector<8x32xf32>
    %99 = vector.extract_strided_slice %84 {offsets = [0, 384], sizes = [8, 32], strides = [1, 1]} : vector<8x512xf32> to vector<8x32xf32>
    %100 = arith.negf %99 : vector<8x32xf32>
    %101 = math.exp %100 : vector<8x32xf32>
    %cst_35 = arith.constant 1.000000e+00 : f32
    %102 = vector.broadcast %cst_35 : f32 to vector<8x32xf32>
    %103 = arith.addf %102, %101 : vector<8x32xf32>
    %104 = arith.divf %102, %103 : vector<8x32xf32>
    %105 = arith.mulf %96, %47 : vector<8x32xf32>
    %106 = arith.mulf %90, %98 : vector<8x32xf32>
    %107 = arith.addf %105, %106 : vector<8x32xf32>
    %108 = math.tanh %107 : vector<8x32xf32>
    %109 = arith.mulf %104, %108 : vector<8x32xf32>
    %110 = arith.truncf %109 : vector<8x32xf32> to vector<8x32xbf16>
    %cst_36 = arith.constant dense<0.000000e+00> : vector<8x512xf32>
    %111 = tpu.matmul %110, %1, %cst_36 {dimension_numbers = #tpu.dot_dimension_numbers<[1], [0], [0], [1], [0, 0, 1, 1], [], []>} : vector<8x32xbf16>, vector<32x512xbf16>, vector<8x512xf32> -> vector<8x512xf32>
    %112 = arith.addf %111, %80 : vector<8x512xf32>
    %113 = arith.addf %112, %5 : vector<8x512xf32>
    %114 = vector.extract_strided_slice %113 {offsets = [0, 0], sizes = [8, 32], strides = [1, 1]} : vector<8x512xf32> to vector<8x32xf32>
    %115 = arith.negf %114 : vector<8x32xf32>
    %116 = math.exp %115 : vector<8x32xf32>
    %cst_37 = arith.constant 1.000000e+00 : f32
    %117 = vector.broadcast %cst_37 : f32 to vector<8x32xf32>
    %118 = arith.addf %117, %116 : vector<8x32xf32>
    %119 = arith.divf %117, %118 : vector<8x32xf32>
    %120 = vector.extract_strided_slice %113 {offsets = [0, 128], sizes = [8, 32], strides = [1, 1]} : vector<8x512xf32> to vector<8x32xf32>
    %121 = arith.negf %120 : vector<8x32xf32>
    %122 = math.exp %121 : vector<8x32xf32>
    %cst_38 = arith.constant 1.000000e+00 : f32
    %123 = vector.broadcast %cst_38 : f32 to vector<8x32xf32>
    %124 = arith.addf %123, %122 : vector<8x32xf32>
    %125 = arith.divf %123, %124 : vector<8x32xf32>
    %126 = vector.extract_strided_slice %113 {offsets = [0, 256], sizes = [8, 32], strides = [1, 1]} : vector<8x512xf32> to vector<8x32xf32>
    %127 = math.tanh %126 : vector<8x32xf32>
    %128 = vector.extract_strided_slice %113 {offsets = [0, 384], sizes = [8, 32], strides = [1, 1]} : vector<8x512xf32> to vector<8x32xf32>
    %129 = arith.negf %128 : vector<8x32xf32>
    %130 = math.exp %129 : vector<8x32xf32>
    %cst_39 = arith.constant 1.000000e+00 : f32
    %131 = vector.broadcast %cst_39 : f32 to vector<8x32xf32>
    %132 = arith.addf %131, %130 : vector<8x32xf32>
    %133 = arith.divf %131, %132 : vector<8x32xf32>
    %134 = arith.mulf %125, %76 : vector<8x32xf32>
    %135 = arith.mulf %119, %127 : vector<8x32xf32>
    %136 = arith.addf %134, %135 : vector<8x32xf32>
    %137 = math.tanh %136 : vector<8x32xf32>
    %138 = arith.mulf %133, %137 : vector<8x32xf32>
    %139 = arith.truncf %138 : vector<8x32xf32> to vector<8x32xbf16>
    %cst_40 = arith.constant dense<0.000000e+00> : vector<8x512xf32>
    %140 = tpu.matmul %139, %2, %cst_40 {dimension_numbers = #tpu.dot_dimension_numbers<[1], [0], [0], [1], [0, 0, 1, 1], [], []>} : vector<8x32xbf16>, vector<32x512xbf16>, vector<8x512xf32> -> vector<8x512xf32>
    %141 = vector.extract_strided_slice %17 {offsets = [8, 0], sizes = [8, 512], strides = [1, 1]} : vector<56x512xf32> to vector<8x512xf32>
    %142 = arith.truncf %109 : vector<8x32xf32> to vector<8x32xbf16>
    %cst_41 = arith.constant dense<0.000000e+00> : vector<8x512xf32>
    %143 = tpu.matmul %142, %0, %cst_41 {dimension_numbers = #tpu.dot_dimension_numbers<[1], [0], [0], [1], [0, 0, 1, 1], [], []>} : vector<8x32xbf16>, vector<32x512xbf16>, vector<8x512xf32> -> vector<8x512xf32>
    %144 = arith.addf %141, %143 : vector<8x512xf32>
    %145 = vector.extract_strided_slice %144 {offsets = [0, 0], sizes = [8, 32], strides = [1, 1]} : vector<8x512xf32> to vector<8x32xf32>
    %146 = arith.negf %145 : vector<8x32xf32>
    %147 = math.exp %146 : vector<8x32xf32>
    %cst_42 = arith.constant 1.000000e+00 : f32
    %148 = vector.broadcast %cst_42 : f32 to vector<8x32xf32>
    %149 = arith.addf %148, %147 : vector<8x32xf32>
    %150 = arith.divf %148, %149 : vector<8x32xf32>
    %151 = vector.extract_strided_slice %144 {offsets = [0, 128], sizes = [8, 32], strides = [1, 1]} : vector<8x512xf32> to vector<8x32xf32>
    %152 = arith.negf %151 : vector<8x32xf32>
    %153 = math.exp %152 : vector<8x32xf32>
    %cst_43 = arith.constant 1.000000e+00 : f32
    %154 = vector.broadcast %cst_43 : f32 to vector<8x32xf32>
    %155 = arith.addf %154, %153 : vector<8x32xf32>
    %156 = arith.divf %154, %155 : vector<8x32xf32>
    %157 = vector.extract_strided_slice %144 {offsets = [0, 256], sizes = [8, 32], strides = [1, 1]} : vector<8x512xf32> to vector<8x32xf32>
    %158 = math.tanh %157 : vector<8x32xf32>
    %159 = vector.extract_strided_slice %144 {offsets = [0, 384], sizes = [8, 32], strides = [1, 1]} : vector<8x512xf32> to vector<8x32xf32>
    %160 = arith.negf %159 : vector<8x32xf32>
    %161 = math.exp %160 : vector<8x32xf32>
    %cst_44 = arith.constant 1.000000e+00 : f32
    %162 = vector.broadcast %cst_44 : f32 to vector<8x32xf32>
    %163 = arith.addf %162, %161 : vector<8x32xf32>
    %164 = arith.divf %162, %163 : vector<8x32xf32>
    %165 = arith.mulf %156, %107 : vector<8x32xf32>
    %166 = arith.mulf %150, %158 : vector<8x32xf32>
    %167 = arith.addf %165, %166 : vector<8x32xf32>
    %168 = math.tanh %167 : vector<8x32xf32>
    %169 = arith.mulf %164, %168 : vector<8x32xf32>
    %170 = arith.truncf %169 : vector<8x32xf32> to vector<8x32xbf16>
    %cst_45 = arith.constant dense<0.000000e+00> : vector<8x512xf32>
    %171 = tpu.matmul %170, %1, %cst_45 {dimension_numbers = #tpu.dot_dimension_numbers<[1], [0], [0], [1], [0, 0, 1, 1], [], []>} : vector<8x32xbf16>, vector<32x512xbf16>, vector<8x512xf32> -> vector<8x512xf32>
    %172 = arith.addf %171, %140 : vector<8x512xf32>
    %173 = arith.addf %172, %5 : vector<8x512xf32>
    %174 = vector.extract_strided_slice %173 {offsets = [0, 0], sizes = [8, 32], strides = [1, 1]} : vector<8x512xf32> to vector<8x32xf32>
    %175 = arith.negf %174 : vector<8x32xf32>
    %176 = math.exp %175 : vector<8x32xf32>
    %cst_46 = arith.constant 1.000000e+00 : f32
    %177 = vector.broadcast %cst_46 : f32 to vector<8x32xf32>
    %178 = arith.addf %177, %176 : vector<8x32xf32>
    %179 = arith.divf %177, %178 : vector<8x32xf32>
    %180 = vector.extract_strided_slice %173 {offsets = [0, 128], sizes = [8, 32], strides = [1, 1]} : vector<8x512xf32> to vector<8x32xf32>
    %181 = arith.negf %180 : vector<8x32xf32>
    %182 = math.exp %181 : vector<8x32xf32>
    %cst_47 = arith.constant 1.000000e+00 : f32
    %183 = vector.broadcast %cst_47 : f32 to vector<8x32xf32>
    %184 = arith.addf %183, %182 : vector<8x32xf32>
    %185 = arith.divf %183, %184 : vector<8x32xf32>
    %186 = vector.extract_strided_slice %173 {offsets = [0, 256], sizes = [8, 32], strides = [1, 1]} : vector<8x512xf32> to vector<8x32xf32>
    %187 = math.tanh %186 : vector<8x32xf32>
    %188 = vector.extract_strided_slice %173 {offsets = [0, 384], sizes = [8, 32], strides = [1, 1]} : vector<8x512xf32> to vector<8x32xf32>
    %189 = arith.negf %188 : vector<8x32xf32>
    %190 = math.exp %189 : vector<8x32xf32>
    %cst_48 = arith.constant 1.000000e+00 : f32
    %191 = vector.broadcast %cst_48 : f32 to vector<8x32xf32>
    %192 = arith.addf %191, %190 : vector<8x32xf32>
    %193 = arith.divf %191, %192 : vector<8x32xf32>
    %194 = arith.mulf %185, %136 : vector<8x32xf32>
    %195 = arith.mulf %179, %187 : vector<8x32xf32>
    %196 = arith.addf %194, %195 : vector<8x32xf32>
    %197 = math.tanh %196 : vector<8x32xf32>
    %198 = arith.mulf %193, %197 : vector<8x32xf32>
    %199 = arith.truncf %198 : vector<8x32xf32> to vector<8x32xbf16>
    %cst_49 = arith.constant dense<0.000000e+00> : vector<8x512xf32>
    %200 = tpu.matmul %199, %2, %cst_49 {dimension_numbers = #tpu.dot_dimension_numbers<[1], [0], [0], [1], [0, 0, 1, 1], [], []>} : vector<8x32xbf16>, vector<32x512xbf16>, vector<8x512xf32> -> vector<8x512xf32>
    %201 = vector.extract_strided_slice %17 {offsets = [16, 0], sizes = [8, 512], strides = [1, 1]} : vector<56x512xf32> to vector<8x512xf32>
    %202 = arith.truncf %169 : vector<8x32xf32> to vector<8x32xbf16>
    %cst_50 = arith.constant dense<0.000000e+00> : vector<8x512xf32>
    %203 = tpu.matmul %202, %0, %cst_50 {dimension_numbers = #tpu.dot_dimension_numbers<[1], [0], [0], [1], [0, 0, 1, 1], [], []>} : vector<8x32xbf16>, vector<32x512xbf16>, vector<8x512xf32> -> vector<8x512xf32>
    %204 = arith.addf %201, %203 : vector<8x512xf32>
    %205 = vector.extract_strided_slice %204 {offsets = [0, 0], sizes = [8, 32], strides = [1, 1]} : vector<8x512xf32> to vector<8x32xf32>
    %206 = arith.negf %205 : vector<8x32xf32>
    %207 = math.exp %206 : vector<8x32xf32>
    %cst_51 = arith.constant 1.000000e+00 : f32
    %208 = vector.broadcast %cst_51 : f32 to vector<8x32xf32>
    %209 = arith.addf %208, %207 : vector<8x32xf32>
    %210 = arith.divf %208, %209 : vector<8x32xf32>
    %211 = vector.extract_strided_slice %204 {offsets = [0, 128], sizes = [8, 32], strides = [1, 1]} : vector<8x512xf32> to vector<8x32xf32>
    %212 = arith.negf %211 : vector<8x32xf32>
    %213 = math.exp %212 : vector<8x32xf32>
    %cst_52 = arith.constant 1.000000e+00 : f32
    %214 = vector.broadcast %cst_52 : f32 to vector<8x32xf32>
    %215 = arith.addf %214, %213 : vector<8x32xf32>
    %216 = arith.divf %214, %215 : vector<8x32xf32>
    %217 = vector.extract_strided_slice %204 {offsets = [0, 256], sizes = [8, 32], strides = [1, 1]} : vector<8x512xf32> to vector<8x32xf32>
    %218 = math.tanh %217 : vector<8x32xf32>
    %219 = vector.extract_strided_slice %204 {offsets = [0, 384], sizes = [8, 32], strides = [1, 1]} : vector<8x512xf32> to vector<8x32xf32>
    %220 = arith.negf %219 : vector<8x32xf32>
    %221 = math.exp %220 : vector<8x32xf32>
    %cst_53 = arith.constant 1.000000e+00 : f32
    %222 = vector.broadcast %cst_53 : f32 to vector<8x32xf32>
    %223 = arith.addf %222, %221 : vector<8x32xf32>
    %224 = arith.divf %222, %223 : vector<8x32xf32>
    %225 = arith.mulf %216, %167 : vector<8x32xf32>
    %226 = arith.mulf %210, %218 : vector<8x32xf32>
    %227 = arith.addf %225, %226 : vector<8x32xf32>
    %228 = math.tanh %227 : vector<8x32xf32>
    %229 = arith.mulf %224, %228 : vector<8x32xf32>
    %230 = arith.truncf %229 : vector<8x32xf32> to vector<8x32xbf16>
    %cst_54 = arith.constant dense<0.000000e+00> : vector<8x512xf32>
    %231 = tpu.matmul %230, %1, %cst_54 {dimension_numbers = #tpu.dot_dimension_numbers<[1], [0], [0], [1], [0, 0, 1, 1], [], []>} : vector<8x32xbf16>, vector<32x512xbf16>, vector<8x512xf32> -> vector<8x512xf32>
    %232 = arith.addf %231, %200 : vector<8x512xf32>
    %233 = arith.addf %232, %5 : vector<8x512xf32>
    %234 = vector.extract_strided_slice %233 {offsets = [0, 0], sizes = [8, 32], strides = [1, 1]} : vector<8x512xf32> to vector<8x32xf32>
    %235 = arith.negf %234 : vector<8x32xf32>
    %236 = math.exp %235 : vector<8x32xf32>
    %cst_55 = arith.constant 1.000000e+00 : f32
    %237 = vector.broadcast %cst_55 : f32 to vector<8x32xf32>
    %238 = arith.addf %237, %236 : vector<8x32xf32>
    %239 = arith.divf %237, %238 : vector<8x32xf32>
    %240 = vector.extract_strided_slice %233 {offsets = [0, 128], sizes = [8, 32], strides = [1, 1]} : vector<8x512xf32> to vector<8x32xf32>
    %241 = arith.negf %240 : vector<8x32xf32>
    %242 = math.exp %241 : vector<8x32xf32>
    %cst_56 = arith.constant 1.000000e+00 : f32
    %243 = vector.broadcast %cst_56 : f32 to vector<8x32xf32>
    %244 = arith.addf %243, %242 : vector<8x32xf32>
    %245 = arith.divf %243, %244 : vector<8x32xf32>
    %246 = vector.extract_strided_slice %233 {offsets = [0, 256], sizes = [8, 32], strides = [1, 1]} : vector<8x512xf32> to vector<8x32xf32>
    %247 = math.tanh %246 : vector<8x32xf32>
    %248 = vector.extract_strided_slice %233 {offsets = [0, 384], sizes = [8, 32], strides = [1, 1]} : vector<8x512xf32> to vector<8x32xf32>
    %249 = arith.negf %248 : vector<8x32xf32>
    %250 = math.exp %249 : vector<8x32xf32>
    %cst_57 = arith.constant 1.000000e+00 : f32
    %251 = vector.broadcast %cst_57 : f32 to vector<8x32xf32>
    %252 = arith.addf %251, %250 : vector<8x32xf32>
    %253 = arith.divf %251, %252 : vector<8x32xf32>
    %254 = arith.mulf %245, %196 : vector<8x32xf32>
    %255 = arith.mulf %239, %247 : vector<8x32xf32>
    %256 = arith.addf %254, %255 : vector<8x32xf32>
    %257 = math.tanh %256 : vector<8x32xf32>
    %258 = arith.mulf %253, %257 : vector<8x32xf32>
    %259 = arith.truncf %258 : vector<8x32xf32> to vector<8x32xbf16>
    %cst_58 = arith.constant dense<0.000000e+00> : vector<8x512xf32>
    %260 = tpu.matmul %259, %2, %cst_58 {dimension_numbers = #tpu.dot_dimension_numbers<[1], [0], [0], [1], [0, 0, 1, 1], [], []>} : vector<8x32xbf16>, vector<32x512xbf16>, vector<8x512xf32> -> vector<8x512xf32>
    %261 = vector.extract_strided_slice %17 {offsets = [24, 0], sizes = [8, 512], strides = [1, 1]} : vector<56x512xf32> to vector<8x512xf32>
    %262 = arith.truncf %229 : vector<8x32xf32> to vector<8x32xbf16>
    %cst_59 = arith.constant dense<0.000000e+00> : vector<8x512xf32>
    %263 = tpu.matmul %262, %0, %cst_59 {dimension_numbers = #tpu.dot_dimension_numbers<[1], [0], [0], [1], [0, 0, 1, 1], [], []>} : vector<8x32xbf16>, vector<32x512xbf16>, vector<8x512xf32> -> vector<8x512xf32>
    %264 = arith.addf %261, %263 : vector<8x512xf32>
    %265 = vector.extract_strided_slice %264 {offsets = [0, 0], sizes = [8, 32], strides = [1, 1]} : vector<8x512xf32> to vector<8x32xf32>
    %266 = arith.negf %265 : vector<8x32xf32>
    %267 = math.exp %266 : vector<8x32xf32>
    %cst_60 = arith.constant 1.000000e+00 : f32
    %268 = vector.broadcast %cst_60 : f32 to vector<8x32xf32>
    %269 = arith.addf %268, %267 : vector<8x32xf32>
    %270 = arith.divf %268, %269 : vector<8x32xf32>
    %271 = vector.extract_strided_slice %264 {offsets = [0, 128], sizes = [8, 32], strides = [1, 1]} : vector<8x512xf32> to vector<8x32xf32>
    %272 = arith.negf %271 : vector<8x32xf32>
    %273 = math.exp %272 : vector<8x32xf32>
    %cst_61 = arith.constant 1.000000e+00 : f32
    %274 = vector.broadcast %cst_61 : f32 to vector<8x32xf32>
    %275 = arith.addf %274, %273 : vector<8x32xf32>
    %276 = arith.divf %274, %275 : vector<8x32xf32>
    %277 = vector.extract_strided_slice %264 {offsets = [0, 256], sizes = [8, 32], strides = [1, 1]} : vector<8x512xf32> to vector<8x32xf32>
    %278 = math.tanh %277 : vector<8x32xf32>
    %279 = vector.extract_strided_slice %264 {offsets = [0, 384], sizes = [8, 32], strides = [1, 1]} : vector<8x512xf32> to vector<8x32xf32>
    %280 = arith.negf %279 : vector<8x32xf32>
    %281 = math.exp %280 : vector<8x32xf32>
    %cst_62 = arith.constant 1.000000e+00 : f32
    %282 = vector.broadcast %cst_62 : f32 to vector<8x32xf32>
    %283 = arith.addf %282, %281 : vector<8x32xf32>
    %284 = arith.divf %282, %283 : vector<8x32xf32>
    %285 = arith.mulf %276, %227 : vector<8x32xf32>
    %286 = arith.mulf %270, %278 : vector<8x32xf32>
    %287 = arith.addf %285, %286 : vector<8x32xf32>
    %288 = math.tanh %287 : vector<8x32xf32>
    %289 = arith.mulf %284, %288 : vector<8x32xf32>
    %290 = arith.truncf %289 : vector<8x32xf32> to vector<8x32xbf16>
    %cst_63 = arith.constant dense<0.000000e+00> : vector<8x512xf32>
    %291 = tpu.matmul %290, %1, %cst_63 {dimension_numbers = #tpu.dot_dimension_numbers<[1], [0], [0], [1], [0, 0, 1, 1], [], []>} : vector<8x32xbf16>, vector<32x512xbf16>, vector<8x512xf32> -> vector<8x512xf32>
    %292 = arith.addf %291, %260 : vector<8x512xf32>
    %293 = arith.addf %292, %5 : vector<8x512xf32>
    %294 = vector.extract_strided_slice %293 {offsets = [0, 0], sizes = [8, 32], strides = [1, 1]} : vector<8x512xf32> to vector<8x32xf32>
    %295 = arith.negf %294 : vector<8x32xf32>
    %296 = math.exp %295 : vector<8x32xf32>
    %cst_64 = arith.constant 1.000000e+00 : f32
    %297 = vector.broadcast %cst_64 : f32 to vector<8x32xf32>
    %298 = arith.addf %297, %296 : vector<8x32xf32>
    %299 = arith.divf %297, %298 : vector<8x32xf32>
    %300 = vector.extract_strided_slice %293 {offsets = [0, 128], sizes = [8, 32], strides = [1, 1]} : vector<8x512xf32> to vector<8x32xf32>
    %301 = arith.negf %300 : vector<8x32xf32>
    %302 = math.exp %301 : vector<8x32xf32>
    %cst_65 = arith.constant 1.000000e+00 : f32
    %303 = vector.broadcast %cst_65 : f32 to vector<8x32xf32>
    %304 = arith.addf %303, %302 : vector<8x32xf32>
    %305 = arith.divf %303, %304 : vector<8x32xf32>
    %306 = vector.extract_strided_slice %293 {offsets = [0, 256], sizes = [8, 32], strides = [1, 1]} : vector<8x512xf32> to vector<8x32xf32>
    %307 = math.tanh %306 : vector<8x32xf32>
    %308 = vector.extract_strided_slice %293 {offsets = [0, 384], sizes = [8, 32], strides = [1, 1]} : vector<8x512xf32> to vector<8x32xf32>
    %309 = arith.negf %308 : vector<8x32xf32>
    %310 = math.exp %309 : vector<8x32xf32>
    %cst_66 = arith.constant 1.000000e+00 : f32
    %311 = vector.broadcast %cst_66 : f32 to vector<8x32xf32>
    %312 = arith.addf %311, %310 : vector<8x32xf32>
    %313 = arith.divf %311, %312 : vector<8x32xf32>
    %314 = arith.mulf %305, %256 : vector<8x32xf32>
    %315 = arith.mulf %299, %307 : vector<8x32xf32>
    %316 = arith.addf %314, %315 : vector<8x32xf32>
    %317 = math.tanh %316 : vector<8x32xf32>
    %318 = arith.mulf %313, %317 : vector<8x32xf32>
    %319 = arith.truncf %318 : vector<8x32xf32> to vector<8x32xbf16>
    %cst_67 = arith.constant dense<0.000000e+00> : vector<8x512xf32>
    %320 = tpu.matmul %319, %2, %cst_67 {dimension_numbers = #tpu.dot_dimension_numbers<[1], [0], [0], [1], [0, 0, 1, 1], [], []>} : vector<8x32xbf16>, vector<32x512xbf16>, vector<8x512xf32> -> vector<8x512xf32>
    %321 = vector.extract_strided_slice %17 {offsets = [32, 0], sizes = [8, 512], strides = [1, 1]} : vector<56x512xf32> to vector<8x512xf32>
    %322 = arith.truncf %289 : vector<8x32xf32> to vector<8x32xbf16>
    %cst_68 = arith.constant dense<0.000000e+00> : vector<8x512xf32>
    %323 = tpu.matmul %322, %0, %cst_68 {dimension_numbers = #tpu.dot_dimension_numbers<[1], [0], [0], [1], [0, 0, 1, 1], [], []>} : vector<8x32xbf16>, vector<32x512xbf16>, vector<8x512xf32> -> vector<8x512xf32>
    %324 = arith.addf %321, %323 : vector<8x512xf32>
    %325 = vector.extract_strided_slice %324 {offsets = [0, 0], sizes = [8, 32], strides = [1, 1]} : vector<8x512xf32> to vector<8x32xf32>
    %326 = arith.negf %325 : vector<8x32xf32>
    %327 = math.exp %326 : vector<8x32xf32>
    %cst_69 = arith.constant 1.000000e+00 : f32
    %328 = vector.broadcast %cst_69 : f32 to vector<8x32xf32>
    %329 = arith.addf %328, %327 : vector<8x32xf32>
    %330 = arith.divf %328, %329 : vector<8x32xf32>
    %331 = vector.extract_strided_slice %324 {offsets = [0, 128], sizes = [8, 32], strides = [1, 1]} : vector<8x512xf32> to vector<8x32xf32>
    %332 = arith.negf %331 : vector<8x32xf32>
    %333 = math.exp %332 : vector<8x32xf32>
    %cst_70 = arith.constant 1.000000e+00 : f32
    %334 = vector.broadcast %cst_70 : f32 to vector<8x32xf32>
    %335 = arith.addf %334, %333 : vector<8x32xf32>
    %336 = arith.divf %334, %335 : vector<8x32xf32>
    %337 = vector.extract_strided_slice %324 {offsets = [0, 256], sizes = [8, 32], strides = [1, 1]} : vector<8x512xf32> to vector<8x32xf32>
    %338 = math.tanh %337 : vector<8x32xf32>
    %339 = vector.extract_strided_slice %324 {offsets = [0, 384], sizes = [8, 32], strides = [1, 1]} : vector<8x512xf32> to vector<8x32xf32>
    %340 = arith.negf %339 : vector<8x32xf32>
    %341 = math.exp %340 : vector<8x32xf32>
    %cst_71 = arith.constant 1.000000e+00 : f32
    %342 = vector.broadcast %cst_71 : f32 to vector<8x32xf32>
    %343 = arith.addf %342, %341 : vector<8x32xf32>
    %344 = arith.divf %342, %343 : vector<8x32xf32>
    %345 = arith.mulf %336, %287 : vector<8x32xf32>
    %346 = arith.mulf %330, %338 : vector<8x32xf32>
    %347 = arith.addf %345, %346 : vector<8x32xf32>
    %348 = math.tanh %347 : vector<8x32xf32>
    %349 = arith.mulf %344, %348 : vector<8x32xf32>
    %350 = arith.truncf %349 : vector<8x32xf32> to vector<8x32xbf16>
    %cst_72 = arith.constant dense<0.000000e+00> : vector<8x512xf32>
    %351 = tpu.matmul %350, %1, %cst_72 {dimension_numbers = #tpu.dot_dimension_numbers<[1], [0], [0], [1], [0, 0, 1, 1], [], []>} : vector<8x32xbf16>, vector<32x512xbf16>, vector<8x512xf32> -> vector<8x512xf32>
    %352 = arith.addf %351, %320 : vector<8x512xf32>
    %353 = arith.addf %352, %5 : vector<8x512xf32>
    %354 = vector.extract_strided_slice %353 {offsets = [0, 0], sizes = [8, 32], strides = [1, 1]} : vector<8x512xf32> to vector<8x32xf32>
    %355 = arith.negf %354 : vector<8x32xf32>
    %356 = math.exp %355 : vector<8x32xf32>
    %cst_73 = arith.constant 1.000000e+00 : f32
    %357 = vector.broadcast %cst_73 : f32 to vector<8x32xf32>
    %358 = arith.addf %357, %356 : vector<8x32xf32>
    %359 = arith.divf %357, %358 : vector<8x32xf32>
    %360 = vector.extract_strided_slice %353 {offsets = [0, 128], sizes = [8, 32], strides = [1, 1]} : vector<8x512xf32> to vector<8x32xf32>
    %361 = arith.negf %360 : vector<8x32xf32>
    %362 = math.exp %361 : vector<8x32xf32>
    %cst_74 = arith.constant 1.000000e+00 : f32
    %363 = vector.broadcast %cst_74 : f32 to vector<8x32xf32>
    %364 = arith.addf %363, %362 : vector<8x32xf32>
    %365 = arith.divf %363, %364 : vector<8x32xf32>
    %366 = vector.extract_strided_slice %353 {offsets = [0, 256], sizes = [8, 32], strides = [1, 1]} : vector<8x512xf32> to vector<8x32xf32>
    %367 = math.tanh %366 : vector<8x32xf32>
    %368 = vector.extract_strided_slice %353 {offsets = [0, 384], sizes = [8, 32], strides = [1, 1]} : vector<8x512xf32> to vector<8x32xf32>
    %369 = arith.negf %368 : vector<8x32xf32>
    %370 = math.exp %369 : vector<8x32xf32>
    %cst_75 = arith.constant 1.000000e+00 : f32
    %371 = vector.broadcast %cst_75 : f32 to vector<8x32xf32>
    %372 = arith.addf %371, %370 : vector<8x32xf32>
    %373 = arith.divf %371, %372 : vector<8x32xf32>
    %374 = arith.mulf %365, %316 : vector<8x32xf32>
    %375 = arith.mulf %359, %367 : vector<8x32xf32>
    %376 = arith.addf %374, %375 : vector<8x32xf32>
    %377 = math.tanh %376 : vector<8x32xf32>
    %378 = arith.mulf %373, %377 : vector<8x32xf32>
    %379 = arith.truncf %378 : vector<8x32xf32> to vector<8x32xbf16>
    %cst_76 = arith.constant dense<0.000000e+00> : vector<8x512xf32>
    %380 = tpu.matmul %379, %2, %cst_76 {dimension_numbers = #tpu.dot_dimension_numbers<[1], [0], [0], [1], [0, 0, 1, 1], [], []>} : vector<8x32xbf16>, vector<32x512xbf16>, vector<8x512xf32> -> vector<8x512xf32>
    %381 = vector.extract_strided_slice %17 {offsets = [40, 0], sizes = [8, 512], strides = [1, 1]} : vector<56x512xf32> to vector<8x512xf32>
    %382 = arith.truncf %349 : vector<8x32xf32> to vector<8x32xbf16>
    %cst_77 = arith.constant dense<0.000000e+00> : vector<8x512xf32>
    %383 = tpu.matmul %382, %0, %cst_77 {dimension_numbers = #tpu.dot_dimension_numbers<[1], [0], [0], [1], [0, 0, 1, 1], [], []>} : vector<8x32xbf16>, vector<32x512xbf16>, vector<8x512xf32> -> vector<8x512xf32>
    %384 = arith.addf %381, %383 : vector<8x512xf32>
    %385 = vector.extract_strided_slice %384 {offsets = [0, 0], sizes = [8, 32], strides = [1, 1]} : vector<8x512xf32> to vector<8x32xf32>
    %386 = arith.negf %385 : vector<8x32xf32>
    %387 = math.exp %386 : vector<8x32xf32>
    %cst_78 = arith.constant 1.000000e+00 : f32
    %388 = vector.broadcast %cst_78 : f32 to vector<8x32xf32>
    %389 = arith.addf %388, %387 : vector<8x32xf32>
    %390 = arith.divf %388, %389 : vector<8x32xf32>
    %391 = vector.extract_strided_slice %384 {offsets = [0, 128], sizes = [8, 32], strides = [1, 1]} : vector<8x512xf32> to vector<8x32xf32>
    %392 = arith.negf %391 : vector<8x32xf32>
    %393 = math.exp %392 : vector<8x32xf32>
    %cst_79 = arith.constant 1.000000e+00 : f32
    %394 = vector.broadcast %cst_79 : f32 to vector<8x32xf32>
    %395 = arith.addf %394, %393 : vector<8x32xf32>
    %396 = arith.divf %394, %395 : vector<8x32xf32>
    %397 = vector.extract_strided_slice %384 {offsets = [0, 256], sizes = [8, 32], strides = [1, 1]} : vector<8x512xf32> to vector<8x32xf32>
    %398 = math.tanh %397 : vector<8x32xf32>
    %399 = vector.extract_strided_slice %384 {offsets = [0, 384], sizes = [8, 32], strides = [1, 1]} : vector<8x512xf32> to vector<8x32xf32>
    %400 = arith.negf %399 : vector<8x32xf32>
    %401 = math.exp %400 : vector<8x32xf32>
    %cst_80 = arith.constant 1.000000e+00 : f32
    %402 = vector.broadcast %cst_80 : f32 to vector<8x32xf32>
    %403 = arith.addf %402, %401 : vector<8x32xf32>
    %404 = arith.divf %402, %403 : vector<8x32xf32>
    %405 = arith.mulf %396, %347 : vector<8x32xf32>
    %406 = arith.mulf %390, %398 : vector<8x32xf32>
    %407 = arith.addf %405, %406 : vector<8x32xf32>
    %408 = math.tanh %407 : vector<8x32xf32>
    %409 = arith.mulf %404, %408 : vector<8x32xf32>
    %410 = arith.truncf %409 : vector<8x32xf32> to vector<8x32xbf16>
    %cst_81 = arith.constant dense<0.000000e+00> : vector<8x512xf32>
    %411 = tpu.matmul %410, %1, %cst_81 {dimension_numbers = #tpu.dot_dimension_numbers<[1], [0], [0], [1], [0, 0, 1, 1], [], []>} : vector<8x32xbf16>, vector<32x512xbf16>, vector<8x512xf32> -> vector<8x512xf32>
    %412 = arith.addf %411, %380 : vector<8x512xf32>
    %413 = arith.addf %412, %5 : vector<8x512xf32>
    %414 = vector.extract_strided_slice %413 {offsets = [0, 0], sizes = [8, 32], strides = [1, 1]} : vector<8x512xf32> to vector<8x32xf32>
    %415 = arith.negf %414 : vector<8x32xf32>
    %416 = math.exp %415 : vector<8x32xf32>
    %cst_82 = arith.constant 1.000000e+00 : f32
    %417 = vector.broadcast %cst_82 : f32 to vector<8x32xf32>
    %418 = arith.addf %417, %416 : vector<8x32xf32>
    %419 = arith.divf %417, %418 : vector<8x32xf32>
    %420 = vector.extract_strided_slice %413 {offsets = [0, 128], sizes = [8, 32], strides = [1, 1]} : vector<8x512xf32> to vector<8x32xf32>
    %421 = arith.negf %420 : vector<8x32xf32>
    %422 = math.exp %421 : vector<8x32xf32>
    %cst_83 = arith.constant 1.000000e+00 : f32
    %423 = vector.broadcast %cst_83 : f32 to vector<8x32xf32>
    %424 = arith.addf %423, %422 : vector<8x32xf32>
    %425 = arith.divf %423, %424 : vector<8x32xf32>
    %426 = vector.extract_strided_slice %413 {offsets = [0, 256], sizes = [8, 32], strides = [1, 1]} : vector<8x512xf32> to vector<8x32xf32>
    %427 = math.tanh %426 : vector<8x32xf32>
    %428 = vector.extract_strided_slice %413 {offsets = [0, 384], sizes = [8, 32], strides = [1, 1]} : vector<8x512xf32> to vector<8x32xf32>
    %429 = arith.negf %428 : vector<8x32xf32>
    %430 = math.exp %429 : vector<8x32xf32>
    %cst_84 = arith.constant 1.000000e+00 : f32
    %431 = vector.broadcast %cst_84 : f32 to vector<8x32xf32>
    %432 = arith.addf %431, %430 : vector<8x32xf32>
    %433 = arith.divf %431, %432 : vector<8x32xf32>
    %434 = arith.mulf %425, %376 : vector<8x32xf32>
    %435 = arith.mulf %419, %427 : vector<8x32xf32>
    %436 = arith.addf %434, %435 : vector<8x32xf32>
    %437 = math.tanh %436 : vector<8x32xf32>
    %438 = arith.mulf %433, %437 : vector<8x32xf32>
    %439 = arith.truncf %438 : vector<8x32xf32> to vector<8x32xbf16>
    %cst_85 = arith.constant dense<0.000000e+00> : vector<8x512xf32>
    %440 = tpu.matmul %439, %2, %cst_85 {dimension_numbers = #tpu.dot_dimension_numbers<[1], [0], [0], [1], [0, 0, 1, 1], [], []>} : vector<8x32xbf16>, vector<32x512xbf16>, vector<8x512xf32> -> vector<8x512xf32>
    %441 = vector.extract_strided_slice %17 {offsets = [48, 0], sizes = [8, 512], strides = [1, 1]} : vector<56x512xf32> to vector<8x512xf32>
    %442 = arith.truncf %409 : vector<8x32xf32> to vector<8x32xbf16>
    %cst_86 = arith.constant dense<0.000000e+00> : vector<8x512xf32>
    %443 = tpu.matmul %442, %0, %cst_86 {dimension_numbers = #tpu.dot_dimension_numbers<[1], [0], [0], [1], [0, 0, 1, 1], [], []>} : vector<8x32xbf16>, vector<32x512xbf16>, vector<8x512xf32> -> vector<8x512xf32>
    %444 = arith.addf %441, %443 : vector<8x512xf32>
    %445 = vector.extract_strided_slice %444 {offsets = [0, 0], sizes = [8, 32], strides = [1, 1]} : vector<8x512xf32> to vector<8x32xf32>
    %446 = arith.negf %445 : vector<8x32xf32>
    %447 = math.exp %446 : vector<8x32xf32>
    %cst_87 = arith.constant 1.000000e+00 : f32
    %448 = vector.broadcast %cst_87 : f32 to vector<8x32xf32>
    %449 = arith.addf %448, %447 : vector<8x32xf32>
    %450 = arith.divf %448, %449 : vector<8x32xf32>
    %451 = vector.extract_strided_slice %444 {offsets = [0, 128], sizes = [8, 32], strides = [1, 1]} : vector<8x512xf32> to vector<8x32xf32>
    %452 = arith.negf %451 : vector<8x32xf32>
    %453 = math.exp %452 : vector<8x32xf32>
    %cst_88 = arith.constant 1.000000e+00 : f32
    %454 = vector.broadcast %cst_88 : f32 to vector<8x32xf32>
    %455 = arith.addf %454, %453 : vector<8x32xf32>
    %456 = arith.divf %454, %455 : vector<8x32xf32>
    %457 = vector.extract_strided_slice %444 {offsets = [0, 256], sizes = [8, 32], strides = [1, 1]} : vector<8x512xf32> to vector<8x32xf32>
    %458 = math.tanh %457 : vector<8x32xf32>
    %459 = vector.extract_strided_slice %444 {offsets = [0, 384], sizes = [8, 32], strides = [1, 1]} : vector<8x512xf32> to vector<8x32xf32>
    %460 = arith.negf %459 : vector<8x32xf32>
    %461 = math.exp %460 : vector<8x32xf32>
    %cst_89 = arith.constant 1.000000e+00 : f32
    %462 = vector.broadcast %cst_89 : f32 to vector<8x32xf32>
    %463 = arith.addf %462, %461 : vector<8x32xf32>
    %464 = arith.divf %462, %463 : vector<8x32xf32>
    %465 = arith.mulf %456, %407 : vector<8x32xf32>
    %466 = arith.mulf %450, %458 : vector<8x32xf32>
    %467 = arith.addf %465, %466 : vector<8x32xf32>
    %468 = math.tanh %467 : vector<8x32xf32>
    %469 = arith.mulf %464, %468 : vector<8x32xf32>
    %470 = arith.truncf %469 : vector<8x32xf32> to vector<8x32xbf16>
    %cst_90 = arith.constant dense<0.000000e+00> : vector<8x512xf32>
    %471 = tpu.matmul %470, %1, %cst_90 {dimension_numbers = #tpu.dot_dimension_numbers<[1], [0], [0], [1], [0, 0, 1, 1], [], []>} : vector<8x32xbf16>, vector<32x512xbf16>, vector<8x512xf32> -> vector<8x512xf32>
    %472 = arith.addf %471, %440 : vector<8x512xf32>
    %473 = arith.addf %472, %5 : vector<8x512xf32>
    %474 = vector.extract_strided_slice %473 {offsets = [0, 0], sizes = [8, 32], strides = [1, 1]} : vector<8x512xf32> to vector<8x32xf32>
    %475 = arith.negf %474 : vector<8x32xf32>
    %476 = math.exp %475 : vector<8x32xf32>
    %cst_91 = arith.constant 1.000000e+00 : f32
    %477 = vector.broadcast %cst_91 : f32 to vector<8x32xf32>
    %478 = arith.addf %477, %476 : vector<8x32xf32>
    %479 = arith.divf %477, %478 : vector<8x32xf32>
    %480 = vector.extract_strided_slice %473 {offsets = [0, 128], sizes = [8, 32], strides = [1, 1]} : vector<8x512xf32> to vector<8x32xf32>
    %481 = arith.negf %480 : vector<8x32xf32>
    %482 = math.exp %481 : vector<8x32xf32>
    %cst_92 = arith.constant 1.000000e+00 : f32
    %483 = vector.broadcast %cst_92 : f32 to vector<8x32xf32>
    %484 = arith.addf %483, %482 : vector<8x32xf32>
    %485 = arith.divf %483, %484 : vector<8x32xf32>
    %486 = vector.extract_strided_slice %473 {offsets = [0, 256], sizes = [8, 32], strides = [1, 1]} : vector<8x512xf32> to vector<8x32xf32>
    %487 = math.tanh %486 : vector<8x32xf32>
    %488 = vector.extract_strided_slice %473 {offsets = [0, 384], sizes = [8, 32], strides = [1, 1]} : vector<8x512xf32> to vector<8x32xf32>
    %489 = arith.negf %488 : vector<8x32xf32>
    %490 = math.exp %489 : vector<8x32xf32>
    %cst_93 = arith.constant 1.000000e+00 : f32
    %491 = vector.broadcast %cst_93 : f32 to vector<8x32xf32>
    %492 = arith.addf %491, %490 : vector<8x32xf32>
    %493 = arith.divf %491, %492 : vector<8x32xf32>
    %494 = arith.mulf %485, %436 : vector<8x32xf32>
    %495 = arith.mulf %479, %487 : vector<8x32xf32>
    %496 = arith.addf %494, %495 : vector<8x32xf32>
    %497 = math.tanh %496 : vector<8x32xf32>
    %498 = arith.mulf %493, %497 : vector<8x32xf32>
    %499 = arith.truncf %498 : vector<8x32xf32> to vector<8x32xbf16>
    %c0_94 = arith.constant 0 : index
    %c0_95 = arith.constant 0 : index
    %500 = vector.load %arg7[%c0_94, %c0_95] : memref<32x128xbf16, #tpu.memory_space<vmem>>, vector<32x128xbf16>
    %cst_96 = arith.constant dense<0.000000e+00> : vector<8x128xf32>
    %501 = tpu.matmul %499, %500, %cst_96 {dimension_numbers = #tpu.dot_dimension_numbers<[1], [0], [0], [1], [0, 0, 1, 1], [], []>} : vector<8x32xbf16>, vector<32x128xbf16>, vector<8x128xf32> -> vector<8x128xf32>
    %c0_97 = arith.constant 0 : index
    %c0_98 = arith.constant 0 : index
    %502 = vector.load %arg8[%c0_97, %c0_98] : memref<1x128xf32, #tpu.memory_space<vmem>>, vector<1x128xf32>
    %503 = vector.broadcast %502 : vector<1x128xf32> to vector<8x128xf32>
    %504 = arith.addf %501, %503 : vector<8x128xf32>
    %c0_99 = arith.constant 0 : index
    %c0_100 = arith.constant 0 : index
    %505 = vector.load %arg9[%c0_99, %c0_100] : memref<8x128xf32, #tpu.memory_space<vmem>>, vector<8x128xf32>
    tpu.vector_store %arg9[%c0_99, %c0_100], %504 {strides = array<i32>} : memref<8x128xf32, #tpu.memory_space<vmem>>, vector<8x128xf32>,
    return
  }
}

</mosaic_0001>

<bundles_post_ra>
// kernel: rnn_lstm_forward.1
= control target key start
LH: loop header
LB: loop body
LE: loop exit
PB: predicated region body
PF: predicated region fallthrough
CT: control target
= control target key end

     0   :  { %14 = vsyncpa [#allocation3], 0  ;;  %s4588_s0 = inlined_call_operand.vmem [shape: bf16[64,16], index: 0, kind: input, shape index: {}]   ;;  %s4589_s1 = inlined_call_operand.hbm [shape: bf16[16,512], index: 1, kind: input, shape index: {}]   ;;  %s4590_s2 = inlined_call_operand.vmem [shape: bf16[32,512], index: 2, kind: input, shape index: {}]   ;;  %s4591_s3 = inlined_call_operand.hbm [shape: f32[1,512], index: 3, kind: input, shape index: {}]   ;;  %s4592_s4 = inlined_call_operand.vmem [shape: bf16[32,512], index: 4, kind: input, shape index: {}]   ;;  %s4593_s5 = inlined_call_operand.hbm [shape: bf16[32,512], index: 5, kind: input, shape index: {}]   ;;  %s4594_s6 = inlined_call_operand.hbm [shape: f32[1,512], index: 6, kind: input, shape index: {}]   ;;  %s4595_s7 = inlined_call_operand.hbm [shape: bf16[32,128], index: 7, kind: input, shape index: {}]   ;;  %s4596_s8 = inlined_call_operand.vmem [shape: f32[1,128], index: 8, kind: input, shape index: {}]   ;;  %s4597_s9 = inlined_call_operand.vmem [shape: f32[8,128], index: 9, kind: output, shape index: {}]  }
   0x1   :  { %15 = vsyncpa [#allocation5], 0 }
   0x2   :  { %16 = vsyncpa [#allocation8], 0  ;;  %s3639_s30 = smov [#allocation4]   ;;  %s3640_s11 = smov [#allocation7]  }
   0x3   :  { %s39_s10 = sshll.u32 %s3639_s30, 4  ;;  %s63_s12 = sshll.u32 %s3640_s11, 4  ;;  %s40_s10 = int_to_ptr.vmem [resolvable:$true] %s39_s10  ;;  %s64_s12 = int_to_ptr.vmem [resolvable:$true] %s63_s12 }
   0x4   :  { %s3541_s13 = scalar_lea.vmem %s40_s10, 64  ;;  %p3546_p1 = scmp.lt.s32.totalorder %s40_s10, %s40_s10 }
   0x5   :  { %p3542_p0 = scmp.ne.s32.totalorder %s40_s10, %s3541_s13  ;;  %p3547_p2 = scmp.lt.s32.totalorder %s3541_s13, %s3541_s13 }
   0x7   :  { %p3548_p3 = por %p3547_p2, %p3546_p1 }
   0x9   :  { %p3549_p4 = pnand %p3548_p3, %p3542_p0 }
   0xb   :  { %3552 = shalt.err (!%p3549_p4)
}
   0xc   :  { %42 = dma.hbm_to_vmem [thread:$0]  %s4591_s3, 64, %s40_s10, [#allocation5]  }
   0xd   :  { %s3561_s16 = scalar_lea.vmem %s64_s12, 64  ;;  %p3566_p6 = scmp.lt.s32.totalorder %s64_s12, %s64_s12 }
   0xe   :  { %p3562_p5 = scmp.ne.s32.totalorder %s64_s12, %s3561_s16  ;;  %p3567_p7 = scmp.lt.s32.totalorder %s3561_s16, %s3561_s16 }
  0x10   :  { %p3568_p8 = por %p3567_p7, %p3566_p6 }
  0x12   :  { %p3569_p9 = pnand %p3568_p8, %p3562_p5 }
  0x14   :  { %3572 = shalt.err (!%p3569_p9)
}
  0x15   :  { %66 = dma.hbm_to_vmem [thread:$0]  %s4594_s6, 64, %s64_s12, [#allocation8]  }
  0x16   :  { %s3641_s19 = smov [#allocation2]  }
  0x17   :  { %s24_s20 = sshll.u32 %s3641_s19, 4  ;;  %s25_s20 = int_to_ptr.vmem [resolvable:$true] %s24_s20 }
  0x18   :  { %s3581_s21 = scalar_lea.vmem %s25_s20, 512  ;;  %p3586_p11 = scmp.lt.s32.totalorder %s25_s20, %s25_s20 }
  0x19   :  { %p3582_p10 = scmp.ne.s32.totalorder %s25_s20, %s3581_s21  ;;  %p3587_p12 = scmp.lt.s32.totalorder %s3581_s21, %s3581_s21 }
  0x1b   :  { %p3588_p13 = por %p3587_p12, %p3586_p11 }
  0x1d   :  { %p3589_p0 = pnand %p3588_p13, %p3582_p10 }
  0x1f   :  { %3592 = shalt.err (!%p3589_p0)
}
  0x20   :  { %s3642_s3 = smov 256   ;;  %s3643_s22 = smov 16  }
  0x21   :  { %30 = dma.hbm_to_vmem [thread:$0]  %s4589_s1, 512, %s25_s20, [#allocation3], %s3642_s3, %s3642_s3, %s3643_s22  }
  0x22   :  { %s3644_s25 = smov [#allocation6]   ;;  %s3645_s6 = smov [#allocation9]  }
  0x23   :  { %s50_s26 = sshll.u32 %s3644_s25, 4  ;;  %s72_s27 = sshll.u32 %s3645_s6, 4  ;;  %s51_s26 = int_to_ptr.vmem [resolvable:$true] %s50_s26  ;;  %s73_s27 = int_to_ptr.vmem [resolvable:$true] %s72_s27 }
  0x24   :  { %s3601_s28 = scalar_lea.vmem %s51_s26, 1024  ;;  %p3606_p2 = scmp.lt.s32.totalorder %s51_s26, %s51_s26 }
  0x25   :  { %p3602_p1 = scmp.ne.s32.totalorder %s51_s26, %s3601_s28  ;;  %p3607_p3 = scmp.lt.s32.totalorder %s3601_s28, %s3601_s28 }
  0x27   :  { %p3608_p4 = por %p3607_p3, %p3606_p2 }
  0x29   :  { %p3609_p5 = pnand %p3608_p4, %p3602_p1 }
  0x2b   :  { %3612 = shalt.err (!%p3609_p5)
}
  0x2c   :  { %56 = dma.hbm_to_vmem [thread:$0]  %s4593_s5, 1024, %s51_s26, [#allocation5], %s3642_s3, %s3642_s3, %s3643_s22  }
  0x2d   :  { %s3621_s10 = scalar_lea.vmem %s73_s27, 256  ;;  %p3626_p7 = scmp.lt.s32.totalorder %s73_s27, %s73_s27 }
  0x2e   :  { %p3622_p6 = scmp.ne.s32.totalorder %s73_s27, %s3621_s10  ;;  %p3627_p8 = scmp.lt.s32.totalorder %s3621_s10, %s3621_s10 }
  0x30   :  { %p3628_p9 = por %p3627_p8, %p3626_p7 }
  0x32   :  { %p3629_p10 = pnand %p3628_p9, %p3622_p6 }
  0x34   :  { %3632 = shalt.err (!%p3629_p10)
}
  0x35   :  { %s3646_s1 = smov 64   ;;  %s3647_s11 = smov 4  }
  0x36   :  { %78 = dma.hbm_to_vmem [thread:$0]  %s4595_s7, 256, %s73_s27, [#allocation8], %s3646_s1, %s3646_s1, %s3647_s11  }
  0x37   :  { %3633 = dma.done.wait [#allocation3], 512  }
  0x38   :  { %3634 = vsyncadd [#allocation3], 4294966784 }
  0x39   :  { %3635 = dma.done.wait [#allocation5], 1088  }
  0x3a   :  { %3636 = vsyncadd [#allocation5], 4294966208 }
  0x3b   :  { %3637 = dma.done.wait [#allocation8], 320  }
  0x3c   :  { %3638 = vsyncadd [#allocation8], 4294966976  ;;  %v4602_v0 = vmov 0   ;;  %v3205_v1 = vld [vmem:[#allocation2 + $0x4] ss:$16 sps:$4 sm:$0xff]   ;;  %vm190_vm0 = vcmask 130048   ;;  %v123_v26 = vlaneseq }
  0x3d   :  { %226 = vmatprep.mubr.bf16.mxu0 %v4602_v0  ;;  %267 = vmatprep.mubr.bf16.mxu1 %v4602_v0  ;;  %v3207_v2 = vld [vmem:[#allocation2 + $0xc] ss:$16 sps:$4 sm:$0xff]   ;;  %v3209_v3 = vld [vmem:[#allocation2] ss:$16 sps:$4 sm:$0xff]   ;;  %v3210_v4 = vld [vmem:[#allocation2 + $0x8] ss:$16 sps:$4 sm:$0xff]  }
  0x3e   :  { %208 = vmatprep.subr.bf16.mxu0 %v3205_v1  ;;  %249 = vmatprep.subr.bf16.mxu1 %v3207_v2  ;;  %v143_v5 = vld [vmem:[%s4588_s0] sm:$0xf]  ;;  %v3724_v6 = vld [vmem:[%s4590_s2 + $0x24] ss:$16 sps:$4 sm:$0xff]   ;;  %v3733_v7 = vld [vmem:[%s4590_s2 + $0x2c] ss:$16 sps:$4 sm:$0xff]  }
  0x3f   :  { %209 = vmatpush1.bf16.msra.mxu0 %v3209_v3  ;;  %250 = vmatpush1.bf16.msra.mxu1 %v3210_v4  ;;  %v3211_v8 = vld [vmem:[%s4588_s0 + $0x4] sm:$0xff]   ;;  %v3742_v9 = vld [vmem:[%s4590_s2 + $0x20] ss:$16 sps:$4 sm:$0xff]   ;;  %v3758_v12 = vld [vmem:[%s4590_s2 + $0xc] ss:$16 sps:$4 sm:$0xff]   ;;  %v3853_v27 = vshrl.u32 %v123_v26, 7 }
  0x40   :  { %327 = vmatprep.subr.bf16.mxu0 %v3205_v1  ;;  %398 = vmatprep.subr.bf16.mxu1 %v3207_v2  ;;  %v3747_v10 = vld [vmem:[%s4590_s2 + $0x4] ss:$16 sps:$4 sm:$0xff]   ;;  %v3753_v11 = vld [vmem:[%s4590_s2 + $0x28] ss:$16 sps:$4 sm:$0xff]   ;;  %v3763_v13 = vld [vmem:[%s4590_s2] ss:$16 sps:$4 sm:$0xff]  }
  0x41   :  { %v3772_v14 = vld [vmem:[%s4590_s2 + $0x8] ss:$16 sps:$4 sm:$0xff]   ;;  %v3215_v15 = vld [vmem:[%s4588_s0 + $0xc] sm:$0xff]   ;;  %v3223_v17 = vld [vmem:[%s4588_s0 + $0x1c] ss:$0 sps:$4 sm:$0xff]   ;;  %v4601_v32 = vsub.s32 0, %v3853_v27 }
  0x42   :  { %3048 = vmatmul.mubr.msk.bf16.vlgmr.msra.gmra.mxu0 %vm190_vm0, %v143_v5  ;;  %3049 = vmatmul.mubr.msk.bf16.vlgmr.msra.gmra.mxu1 %vm190_vm0, %v143_v5  ;;  %v3216_v16 = vld [vmem:[%s4588_s0 + $0x14] sm:$0xff]   ;;  %v3813_v19 = vld [vmem:[%s4592_s4 + $0x2c] ss:$16 sps:$4 sm:$0xff]   ;;  %v3818_v20 = vld [vmem:[%s4592_s4 + $0x20] ss:$16 sps:$4 sm:$0xff]   ;;  %v4598_v33 = vsub.s32 2, %v3853_v27 }
  0x43   :  { %328 = vmatpush1.bf16.msra.mxu0 %v3209_v3  ;;  %399 = vmatpush1.bf16.msra.mxu1 %v3210_v4  ;;  %v3808_v18 = vld [vmem:[%s4592_s4 + $0x24] ss:$16 sps:$4 sm:$0xff]   ;;  %v3823_v21 = vld [vmem:[%s4592_s4 + $0x28] ss:$16 sps:$4 sm:$0xff]   ;;  %v3833_v23 = vld [vmem:[%s4592_s4 + $0xc] ss:$16 sps:$4 sm:$0xff]  }
  0x44   :  { %345 = vmatprep.mubr.bf16.mxu0 %v4602_v0  ;;  %416 = vmatprep.mubr.bf16.mxu1 %v4602_v0  ;;  %v3828_v22 = vld [vmem:[%s4592_s4 + $0x4] ss:$16 sps:$4 sm:$0xff]   ;;  %v3842_v24 = vld [vmem:[%s4592_s4] ss:$16 sps:$4 sm:$0xff]   ;;  %v3847_v25 = vld [vmem:[%s4592_s4 + $0x8] ss:$16 sps:$4 sm:$0xff]  }
  0x45   :  { %511 = vmatprep.subr.bf16.mxu0 %v3724_v6  ;;  %552 = vmatprep.subr.bf16.mxu1 %v3733_v7  ;;  %v148_v34 = vld [vmem:[#allocation4] sm:$0xf]  ;;  %v4600_v37 = vsub.s32 1, %v3853_v27  ;;  %v4599_v38 = vsub.s32 3, %v3853_v27  ;;  %vm495_vm1 = vcmask 261120   ;;  %vm3650_vm2 = vmmov 0  }
  0x46   :  { %v3869_v41 = vrot.slane %v148_v34, %v4601_v32  ;;  %v3873_v42 = vrot.slane %v148_v34, %v4598_v33 }
  0x47   :  { %v3877_v45 = vrot.slane %v148_v34, %v4600_v37  ;;  %v3881_v46 = vrot.slane %v148_v34, %v4599_v38 }
  0x4a   :  { %3054 = vmatmul.mubr.msk.bf16.vlgmr.msra.gmra.mxu0 %vm190_vm0, %v3211_v8  ;;  %3058 = vmatmul.mubr.msk.bf16.vlgmr.msra.gmra.mxu1 %vm190_vm0, %v3211_v8 }
  0x4b   :  { %512 = vmatpush1.bf16.msra.mxu0 %v3742_v9  ;;  %355 = vmatprep.mubr.bf16.mxu0 %v4602_v0 }
  0x4c   :  { %426 = vmatprep.mubr.bf16.mxu1 %v4602_v0  ;;  %513 = vmatprep.subr.bf16.mxu0 %v3747_v10 }
  0x4d   :  { %553 = vmatpush1.bf16.msra.mxu1 %v3753_v11 }
  0x4e   :  { %554 = vmatprep.subr.bf16.mxu1 %v3758_v12 }
  0x4f   :  { %514 = vmatpush1.bf16.msra.mxu0 %v3763_v13 }
  0x50   :  { %665 = vmatprep.subr.bf16.mxu0 %v3808_v18 }
  0x51   :  { %555 = vmatpush1.bf16.msra.mxu1 %v3772_v14 }
  0x52   :  { %3055 = vmatmul.mubr.msk.bf16.gmra.mxu0 %vm190_vm0, %v3215_v15  ;;  %3059 = vmatmul.mubr.msk.bf16.gmra.mxu1 %vm190_vm0, %v3215_v15 }
  0x53   :  { %365 = vmatprep.mubr.bf16.mxu0 %v4602_v0  ;;  %436 = vmatprep.mubr.bf16.mxu1 %v4602_v0 }
  0x54   :  { %706 = vmatprep.subr.bf16.mxu1 %v3813_v19 }
  0x5a   :  { %3056 = vmatmul.mubr.msk.bf16.gmra.mxu0 %vm190_vm0, %v3216_v16  ;;  %3060 = vmatmul.mubr.msk.bf16.gmra.mxu1 %vm190_vm0, %v3216_v16 }
  0x5b   :  { %375 = vmatprep.mubr.bf16.mxu0 %v4602_v0  ;;  %446 = vmatprep.mubr.bf16.mxu1 %v4602_v0 }
  0x62   :  { %3057 = vmatmul.mubr.msk.bf16.gmra.mxu0 %vm190_vm0, %v3223_v17  ;;  %3061 = vmatmul.mubr.msk.bf16.gmra.mxu1 %vm190_vm0, %v3223_v17 }
  0x63   :  { %531 = vmatprep.mubr.bf16.mxu0 %v4602_v0  ;;  %572 = vmatprep.mubr.bf16.mxu1 %v4602_v0 }
  0x6a   :  { %532 = vmatmul.mubr.bf16.vlgmr.msra.gmra.mxu0 %v4602_v0  ;;  %573 = vmatmul.mubr.bf16.vlgmr.msra.gmra.mxu1 %v4602_v0 }
  0x6b   :  { %685 = vmatprep.mubr.bf16.mxu0 %v4602_v0  ;;  %726 = vmatprep.mubr.bf16.mxu1 %v4602_v0 }
  0x6c   :  { %666 = vmatpush1.bf16.msra.mxu0 %v3818_v20  ;;  %707 = vmatpush1.bf16.msra.mxu1 %v3823_v21 }
  0x6d   :  { %667 = vmatprep.subr.bf16.mxu0 %v3828_v22  ;;  %708 = vmatprep.subr.bf16.mxu1 %v3833_v23 }
  0x70   :  { %668 = vmatpush1.bf16.msra.mxu0 %v3842_v24  ;;  %709 = vmatpush1.bf16.msra.mxu1 %v3847_v25 }
 0x102   :  { %v3855_v28 = vpop.f32.mrf.mxu0  ;;  %v3857_v29 = vpop.f32.mrf.mxu1 }
 0x103   :  { %v229_v37 = vadd.f32 %v3855_v28, %v3869_v41 }
 0x104   :  { %v3859_v30 = vpop.f32.mrf.mxu0  ;;  %v3861_v31 = vpop.f32.mrf.mxu1 }
 0x105   :  { %v272_v28 = vadd.f32 %v3861_v31, %v3881_v46 }
 0x106   :  { %v232_v35 = vpop.f32.mrf.mxu0  ;;  %v273_v36 = vpop.f32.mrf.mxu1 }
 0x108   :  { %v233_v39 = vpop.f32.mrf.mxu0  ;;  %v274_v40 = vpop.f32.mrf.mxu1 }
 0x10a   :  { %v347_v43 = vpop.f32.mrf.mxu0  ;;  %v418_v44 = vpop.f32.mrf.mxu1 }
 0x10b   :  { %v3884_v47 = vadd.f32 %v347_v43, %v3869_v41  ;;  %v3887_v48 = vadd.f32 %v418_v44, %v3873_v42 }
 0x10c   :  { %v349_v49 = vpop.f32.mrf.mxu0  ;;  %v420_v50 = vpop.f32.mrf.mxu1 }
 0x10d   :  { %v3890_v51 = vadd.f32 %v349_v49, %v3877_v45  ;;  %v3893_v52 = vadd.f32 %v420_v50, %v3881_v46 }
 0x10e   :  { %v351_v53 = vpop.f32.mrf.mxu0  ;;  %v422_v54 = vpop.f32.mrf.mxu1 }
 0x10f   :  { %v3896_v55 = vadd.f32 %v351_v53, %v3869_v41  ;;  %v3899_v56 = vadd.f32 %v422_v54, %v3873_v42 }
 0x110   :  { %v353_v57 = vpop.f32.mrf.mxu0  ;;  %v424_v58 = vpop.f32.mrf.mxu1 }
 0x111   :  { %v3902_v59 = vadd.f32 %v353_v57, %v3877_v45  ;;  %v3905_v60 = vadd.f32 %v424_v58, %v3881_v46 }
 0x112   :  { %v357_v61 = vpop.f32.mrf.mxu0  ;;  %v428_v62 = vpop.f32.mrf.mxu1 }
 0x113   :  { %v3908_v63 = vadd.f32 %v357_v61, %v3869_v41  ;;  %v3911_v1 = vadd.f32 %v428_v62, %v3873_v42 }
 0x114   :  { %v359_v2 = vpop.f32.mrf.mxu0  ;;  %v430_v3 = vpop.f32.mrf.mxu1 }
 0x115   :  { %v3914_v4 = vadd.f32 %v359_v2, %v3877_v45  ;;  %v3917_v5 = vadd.f32 %v430_v3, %v3881_v46 }
 0x116   :  { %v361_v8 = vpop.f32.mrf.mxu0  ;;  %v432_v15 = vpop.f32.mrf.mxu1 }
 0x117   :  { %v3920_v16 = vadd.f32 %v361_v8, %v3869_v41  ;;  %v3923_v17 = vadd.f32 %v432_v15, %v3873_v42 }
 0x118   :  { %v363_v26 = vpop.f32.mrf.mxu0  ;;  %v434_v34 = vpop.f32.mrf.mxu1 }
 0x119   :  { %4604 = vst [vmem:[#allocation13_spill] sm:$0xff] %v3920_v16  ;;  %4605 = vst [vmem:[#allocation14_spill] sm:$0xff] %v3923_v17  ;;  %v3926_v35 = vadd.f32 %v363_v26, %v3877_v45  ;;  %v3929_v36 = vadd.f32 %v434_v34, %v3881_v46 }
 0x11a   :  { %v367_v39 = vpop.f32.mrf.mxu0  ;;  %v438_v40 = vpop.f32.mrf.mxu1 }
 0x11b   :  { %4606 = vst [vmem:[#allocation15_spill] sm:$0xff] %v3926_v35  ;;  %4607 = vst [vmem:[#allocation16_spill] sm:$0xff] %v3929_v36  ;;  %v3932_v43 = vadd.f32 %v367_v39, %v3869_v41  ;;  %v3935_v44 = vadd.f32 %v438_v40, %v3873_v42 }
 0x11c   :  { %v369_v49 = vpop.f32.mrf.mxu0  ;;  %v440_v50 = vpop.f32.mrf.mxu1 }
 0x11d   :  { %4608 = vst [vmem:[#allocation17_spill] sm:$0xff] %v3932_v43  ;;  %4609 = vst [vmem:[#allocation18_spill] sm:$0xff] %v3935_v44  ;;  %v3938_v53 = vadd.f32 %v369_v49, %v3877_v45  ;;  %v3941_v54 = vadd.f32 %v440_v50, %v3881_v46  ;;  %v4623_v44 = vsub.s32 3, %v3853_v27 }
 0x11e   :  { %v371_v57 = vpop.f32.mrf.mxu0  ;;  %v442_v58 = vpop.f32.mrf.mxu1 }
 0x11f   :  { %4610 = vst [vmem:[#allocation19_spill] sm:$0xff] %v3938_v53  ;;  %4611 = vst [vmem:[#allocation20_spill] sm:$0xff] %v3941_v54  ;;  %v3944_v61 = vadd.f32 %v371_v57, %v3869_v41  ;;  %v3947_v62 = vadd.f32 %v442_v58, %v3873_v42 }
 0x120   :  { %v373_v2 = vpop.f32.mrf.mxu0  ;;  %v444_v3 = vpop.f32.mrf.mxu1 }
 0x121   :  { %4612 = vst [vmem:[#allocation21_spill] sm:$0xff] %v3944_v61  ;;  %4613 = vst [vmem:[#allocation22_spill] sm:$0xff] %v3947_v62  ;;  %v3950_v8 = vadd.f32 %v373_v2, %v3877_v45  ;;  %v3953_v15 = vadd.f32 %v444_v3, %v3881_v46 }
 0x122   :  { %v377_v26 = vpop.f32.mrf.mxu0  ;;  %v448_v34 = vpop.f32.mrf.mxu1 }
 0x123   :  { %4614 = vst [vmem:[#allocation23_spill] sm:$0xff] %v3950_v8  ;;  %4615 = vst [vmem:[#allocation24_spill] sm:$0xff] %v3953_v15  ;;  %v3956_v39 = vadd.f32 %v377_v26, %v3869_v41  ;;  %v3959_v40 = vadd.f32 %v448_v34, %v3873_v42  ;;  %v231_v34 = vadd.f32 %v3859_v30, %v3877_v45 }
 0x124   :  { %v379_v49 = vpop.f32.mrf.mxu0  ;;  %v450_v50 = vpop.f32.mrf.mxu1  ;;  %v270_v41 = vadd.f32 %v3857_v29, %v3873_v42 }
 0x125   :  { %4616 = vst [vmem:[#allocation25_spill] sm:$0xff] %v3956_v39  ;;  %4617 = vst [vmem:[#allocation26_spill] sm:$0xff] %v3959_v40  ;;  %v3962_v57 = vadd.f32 %v379_v49, %v3877_v45  ;;  %v3965_v58 = vadd.f32 %v450_v50, %v3881_v46 }
 0x126   :  { %v381_v2 = vpop.f32.mrf.mxu0  ;;  %v452_v33 = vpop.f32.mrf.mxu1 }
 0x127   :  { %4618 = vst [vmem:[#allocation27_spill] sm:$0xff] %v3962_v57  ;;  %4619 = vst [vmem:[#allocation28_spill] sm:$0xff] %v3965_v58 }
 0x128   :  { %v382_v3 = vpop.f32.mrf.mxu0  ;;  %v453_v38 = vpop.f32.mrf.mxu1 }
 0x12a   :  { %v533_v26 = vpop.f32.mrf.mxu0  ;;  %v574_v32 = vpop.f32.mrf.mxu1 }
 0x12b   :  { %v581_v0 = vadd.f32 %v533_v26, %v229_v37  ;;  %v583_v45 = vadd.f32 %v574_v32, %v270_v41  ;;  %v3992_v41 = vld [vmem:[#allocation6 + $0x28] ss:$16 sps:$4 sm:$0xff]  }
 0x12c   :  { %v535_v40 = vpop.f32.mrf.mxu0  ;;  %v576_v39 = vpop.f32.mrf.mxu1 }
 0x12d   :  { %v3070_v49 = vmul.f32 -1.442695, %v581_v0  ;;  %v582_v57 = vadd.f32 %v535_v40, %v231_v34  ;;  %v584_v38 = vadd.f32 %v576_v39, %v272_v28  ;;  %v3988_v28 = vld [vmem:[#allocation6 + $0x2c] ss:$16 sps:$4 sm:$0xff]  }
 0x12e   :  { %v537_v62 = vpop.f32.mrf.mxu0  ;;  %v578_v50 = vpop.f32.mrf.mxu1  ;;  %856 = vmatprep.subr.bf16.mxu1 %v3988_v28 }
 0x12f   :  { %3253 = vpow2.f32 %v3070_v49  ;;  %v3071_v2 = vmul.f32 -1.442695, %v582_v57  ;;  %v3072_v30 = vmul.f32 -1.442695, %v584_v38  ;;  %v3990_v38 = vld [vmem:[#allocation6 + $0x20] ss:$16 sps:$4 sm:$0xff]  }
 0x130   :  { %v538_v33 = vpop.f32.mrf.mxu0  ;;  %v579_v3 = vpop.f32.mrf.mxu1 }
 0x131   :  { %3255 = vpow2.f32 %v3071_v2  ;;  %v4620_v33 = vmov 0   ;;  %v3986_v3 = vld [vmem:[#allocation6 + $0x24] ss:$16 sps:$4 sm:$0xff]  }
 0x132   :  { %3257 = vpow2.f32 %v3072_v30  ;;  %v3994_v30 = vld [vmem:[#allocation6 + $0x4] ss:$16 sps:$4 sm:$0xff]   ;;  %815 = vmatprep.subr.bf16.mxu0 %v3986_v3 }
 0x13c   :  { %v3254_v37 = vpop.eup %3253 }
 0x13d   :  { %v588_v26 = vadd.f32 1.0, %v3254_v37  ;;  %v3996_v37 = vld [vmem:[#allocation6 + $0xc] ss:$16 sps:$4 sm:$0xff]  }
 0x13e   :  { %v3256_v0 = vpop.eup %3255 }
 0x13f   :  { %3259 = vrcp.f32 %v588_v26  ;;  %v594_v62 = vadd.f32 1.0, %v3256_v0  ;;  %v3258_v40 = vpop.eup %3257  ;;  %v4004_v26 = vld [vmem:[#allocation6 + $0x8] ss:$16 sps:$4 sm:$0xff]   ;;  %v121_v0 = vld [vmem:[#allocation7] sm:$0xf] }
 0x140   :  { %3261 = vtanh.f32 %v583_v45  ;;  %v601_v50 = vadd.f32 1.0, %v3258_v40  ;;  %v4002_v45 = vld [vmem:[#allocation6] ss:$16 sps:$4 sm:$0xff]  }
 0x141   :  { %3263 = vrcp.f32 %v594_v62  ;;  %v4621_v62 = vsub.s32 0, %v3853_v27 }
 0x142   :  { %3265 = vrcp.f32 %v601_v50 }
 0x143   :  { %v4014_v40 = vrot.slane %v121_v0, %v4621_v62 }
 0x14c   :  { %v3260_v57 = vpop.eup %3259 }
 0x14d   :  { %v3262_v34 = vpop.eup %3261 }
 0x14e   :  { %v3264_v49 = vpop.eup %3263  ;;  %v605_v46 = vmul.f32 %v3262_v34, %v3260_v57  ;;  %v4622_v57 = vsub.s32 1, %v3853_v27 }
 0x14f   :  { %v604_v31 = vmul.f32 0.0, %v3264_v49  ;;  %v3266_v29 = vpop.eup %3265 }
 0x150   :  { %v4018_v34 = vrot.slane %v121_v0, %v4622_v57  ;;  %v4024_v57 = vrot.slane %v121_v0, %v4623_v44 }
 0x151   :  { %v3975_v39 = vadd.f32 %v605_v46, %v604_v31 }
 0x153   :  { %3267 = vtanh.f32 %v3975_v39 }
 0x160   :  { %v3268_v32 = vpop.eup %3267 }
 0x161   :  { %v608_v42 = vmul.f32 %v3268_v32, %v3266_v29 }
 0x163   :  { %v3978_v2 = vpack.c.bf16 %v608_v42, %v608_v42 }
 0x165   :  { %3081 = vmatmul.mubr.msk.bf16.vlgmr.msra.gmra.mxu0 %vm495_vm1, %v3978_v2  ;;  %3082 = vmatmul.mubr.msk.bf16.vlgmr.msra.gmra.mxu1 %vm495_vm1, %v3978_v2 }
 0x166   :  { %835 = vmatprep.mubr.bf16.mxu0 %v4620_v33  ;;  %876 = vmatprep.mubr.bf16.mxu1 %v4620_v33 }
 0x167   :  { %816 = vmatpush1.bf16.msra.mxu0 %v3990_v38  ;;  %857 = vmatpush1.bf16.msra.mxu1 %v3992_v41 }
 0x168   :  { %817 = vmatprep.subr.bf16.mxu0 %v3994_v30  ;;  %858 = vmatprep.subr.bf16.mxu1 %v3996_v37 }
 0x16b   :  { %818 = vmatpush1.bf16.msra.mxu0 %v4002_v45  ;;  %859 = vmatpush1.bf16.msra.mxu1 %v4004_v26 }
 0x16c   :  { %897 = vmatprep.subr.bf16.mxu0 %v3724_v6  ;;  %938 = vmatprep.subr.bf16.mxu1 %v3733_v7 }
 0x225   :  { %v687_v49 = vpop.f32.mrf.mxu0  ;;  %v728_v50 = vpop.f32.mrf.mxu1 }
 0x226   :  { %v688_v31 = vadd.f32 %v687_v49, %v4014_v40  ;;  %v4624_v49 = vsub.s32 2, %v3853_v27 }
 0x227   :  { %v689_v46 = vpop.f32.mrf.mxu0  ;;  %v730_v29 = vpop.f32.mrf.mxu1 }
 0x228   :  { %v3083_v32 = vmul.f32 -1.442695, %v688_v31  ;;  %v690_v42 = vadd.f32 %v689_v46, %v4018_v34  ;;  %v731_v54 = vadd.f32 %v730_v29, %v4024_v57  ;;  %v4029_v53 = vrot.slane %v121_v0, %v4624_v49 }
 0x229   :  { %v691_v58 = vpop.f32.mrf.mxu0  ;;  %v732_v15 = vpop.f32.mrf.mxu1 }
 0x22a   :  { %3269 = vpow2.f32 %v3083_v32  ;;  %v3084_v8 = vmul.f32 -1.442695, %v690_v42  ;;  %v3085_v31 = vmul.f32 -1.442695, %v731_v54  ;;  %v729_v58 = vadd.f32 %v728_v50, %v4029_v53 }
 0x22b   :  { %v692_v61 = vpop.f32.mrf.mxu0  ;;  %v733_v62 = vpop.f32.mrf.mxu1 }
 0x22c   :  { %3271 = vpow2.f32 %v3084_v8 }
 0x22d   :  { %3273 = vpow2.f32 %v3085_v31 }
 0x237   :  { %v3270_v43 = vpop.eup %3269 }
 0x238   :  { %v738_v15 = vadd.f32 1.0, %v3270_v43 }
 0x239   :  { %v3272_v46 = vpop.eup %3271 }
 0x23a   :  { %3275 = vrcp.f32 %v738_v15  ;;  %v744_v61 = vadd.f32 1.0, %v3272_v46  ;;  %v3274_v8 = vpop.eup %3273 }
 0x23b   :  { %3277 = vtanh.f32 %v729_v58  ;;  %v751_v29 = vadd.f32 1.0, %v3274_v8 }
 0x23c   :  { %3279 = vrcp.f32 %v744_v61 }
 0x23d   :  { %3281 = vrcp.f32 %v751_v29 }
 0x247   :  { %v3276_v44 = vpop.eup %3275 }
 0x248   :  { %v3278_v32 = vpop.eup %3277 }
 0x249   :  { %v3280_v42 = vpop.eup %3279  ;;  %v755_v27 = vmul.f32 %v3278_v32, %v3276_v44 }
 0x24a   :  { %v754_v62 = vmul.f32 0.0, %v3280_v42  ;;  %v3282_v54 = vpop.eup %3281 }
 0x24c   :  { %v4032_v0 = vadd.f32 %v755_v27, %v754_v62 }
 0x24e   :  { %3283 = vtanh.f32 %v4032_v0 }
 0x25b   :  { %v3284_v43 = vpop.eup %3283 }
 0x25c   :  { %v758_v50 = vmul.f32 %v3284_v43, %v3282_v54 }
 0x25e   :  { %v759_v49 = vpack.c.bf16 %v758_v50, %v758_v50 }
 0x260   :  { %3094 = vmatmul.mubr.msk.bf16.vlgmr.msra.gmra.mxu0 %vm495_vm1, %v759_v49  ;;  %3095 = vmatmul.mubr.msk.bf16.vlgmr.msra.gmra.mxu1 %vm495_vm1, %v759_v49 }
 0x261   :  { %898 = vmatpush1.bf16.msra.mxu0 %v3742_v9  ;;  %939 = vmatpush1.bf16.msra.mxu1 %v3753_v11 }
 0x262   :  { %899 = vmatprep.subr.bf16.mxu0 %v3747_v10  ;;  %940 = vmatprep.subr.bf16.mxu1 %v3758_v12 }
 0x263   :  { %917 = vmatprep.mubr.bf16.mxu0 %v4620_v33  ;;  %958 = vmatprep.mubr.bf16.mxu1 %v4620_v33 }
 0x265   :  { %900 = vmatpush1.bf16.msra.mxu0 %v3763_v13  ;;  %941 = vmatpush1.bf16.msra.mxu1 %v3772_v14 }
 0x266   :  { %1011 = vmatprep.subr.bf16.mxu0 %v3808_v18  ;;  %1052 = vmatprep.subr.bf16.mxu1 %v3813_v19 }
 0x268   :  { %3096 = vmatmul.mubr.msk.bf16.vlgmr.msra.gmra.mxu0 %vm495_vm1, %v3978_v2  ;;  %3097 = vmatmul.mubr.msk.bf16.vlgmr.msra.gmra.mxu1 %vm495_vm1, %v3978_v2 }
 0x269   :  { %1012 = vmatpush1.bf16.msra.mxu0 %v3818_v20  ;;  %1053 = vmatpush1.bf16.msra.mxu1 %v3823_v21 }
 0x26a   :  { %1013 = vmatprep.subr.bf16.mxu0 %v3828_v22  ;;  %1054 = vmatprep.subr.bf16.mxu1 %v3833_v23 }
 0x26b   :  { %1031 = vmatprep.mubr.bf16.mxu0 %v4620_v33  ;;  %1072 = vmatprep.mubr.bf16.mxu1 %v4620_v33 }
 0x26d   :  { %1014 = vmatpush1.bf16.msra.mxu0 %v3842_v24  ;;  %1055 = vmatpush1.bf16.msra.mxu1 %v3847_v25 }
 0x26e   :  { %1125 = vmatprep.subr.bf16.mxu0 %v3986_v3  ;;  %1166 = vmatprep.subr.bf16.mxu1 %v3988_v28 }
 0x320   :  { %v837_v2 = vpop.f32.mrf.mxu0  ;;  %v4061_v31 = vpop.f32.mrf.mxu1 }
 0x322   :  { %v4063_v58 = vpop.f32.mrf.mxu0  ;;  %v4065_v15 = vpop.f32.mrf.mxu1 }
 0x324   :  { %v841_v46 = vpop.f32.mrf.mxu0  ;;  %v882_v61 = vpop.f32.mrf.mxu1 }
 0x326   :  { %v842_v8 = vpop.f32.mrf.mxu0  ;;  %v883_v44 = vpop.f32.mrf.mxu1 }
 0x328   :  { %v919_v32 = vpop.f32.mrf.mxu0  ;;  %v960_v42 = vpop.f32.mrf.mxu1 }
 0x329   :  { %v967_v29 = vadd.f32 %v919_v32, %v3884_v47  ;;  %v969_v61 = vadd.f32 %v960_v42, %v3887_v48 }
 0x32a   :  { %v921_v62 = vpop.f32.mrf.mxu0  ;;  %v962_v27 = vpop.f32.mrf.mxu1 }
 0x32b   :  { %v3098_v54 = vmul.f32 -1.442695, %v967_v29  ;;  %v968_v43 = vadd.f32 %v921_v62, %v3890_v51  ;;  %v970_v46 = vadd.f32 %v962_v27, %v3893_v52 }
 0x32c   :  { %v923_v50 = vpop.f32.mrf.mxu0  ;;  %v964_v49 = vpop.f32.mrf.mxu1 }
 0x32d   :  { %3285 = vpow2.f32 %v3098_v54  ;;  %v3099_v17 = vmul.f32 -1.442695, %v968_v43  ;;  %v3100_v8 = vmul.f32 -1.442695, %v970_v46 }
 0x32e   :  { %v924_v36 = vpop.f32.mrf.mxu0  ;;  %v965_v35 = vpop.f32.mrf.mxu1 }
 0x32f   :  { %3287 = vpow2.f32 %v3099_v17 }
 0x330   :  { %3289 = vtanh.f32 %v969_v61 }
 0x331   :  { %3291 = vpow2.f32 %v3100_v8 }
 0x33a   :  { %v3286_v44 = vpop.eup %3285 }
 0x33b   :  { %v974_v16 = vadd.f32 1.0, %v3286_v44 }
 0x33c   :  { %v3288_v47 = vpop.eup %3287 }
 0x33d   :  { %3293 = vrcp.f32 %v974_v16  ;;  %v980_v32 = vadd.f32 1.0, %v3288_v47  ;;  %v3290_v51 = vpop.eup %3289 }
 0x33e   :  { %v3292_v29 = vpop.eup %3291 }
 0x33f   :  { %3295 = vrcp.f32 %v980_v32  ;;  %v987_v35 = vadd.f32 1.0, %v3292_v29 }
 0x341   :  { %3297 = vrcp.f32 %v987_v35 }
 0x34a   :  { %v3294_v62 = vpop.eup %3293 }
 0x34b   :  { %v991_v54 = vmul.f32 %v3294_v62, %v3290_v51 }
 0x34c   :  { %v3296_v36 = vpop.eup %3295 }
 0x34d   :  { %v990_v17 = vmul.f32 %v3296_v36, %v3975_v39 }
 0x34e   :  { %v3298_v48 = vpop.eup %3297 }
 0x34f   :  { %v4072_v52 = vadd.f32 %v991_v54, %v990_v17 }
 0x351   :  { %3299 = vtanh.f32 %v4072_v52 }
 0x35e   :  { %v3300_v42 = vpop.eup %3299 }
 0x35f   :  { %v994_v27 = vmul.f32 %v3300_v42, %v3298_v48 }
 0x361   :  { %v4075_v43 = vpack.c.bf16 %v994_v27, %v994_v27 }
 0x363   :  { %3101 = vmatmul.mubr.msk.bf16.vlgmr.msra.gmra.mxu0 %vm495_vm1, %v4075_v43  ;;  %3102 = vmatmul.mubr.msk.bf16.vlgmr.msra.gmra.mxu1 %vm495_vm1, %v4075_v43 }
 0x364   :  { %1126 = vmatpush1.bf16.msra.mxu0 %v3990_v38  ;;  %1167 = vmatpush1.bf16.msra.mxu1 %v3992_v41 }
 0x365   :  { %1127 = vmatprep.subr.bf16.mxu0 %v3994_v30  ;;  %1168 = vmatprep.subr.bf16.mxu1 %v3996_v37 }
 0x366   :  { %1145 = vmatprep.mubr.bf16.mxu0 %v4620_v33  ;;  %1186 = vmatprep.mubr.bf16.mxu1 %v4620_v33 }
 0x368   :  { %1128 = vmatpush1.bf16.msra.mxu0 %v4002_v45  ;;  %1169 = vmatpush1.bf16.msra.mxu1 %v4004_v26 }
 0x369   :  { %1207 = vmatprep.subr.bf16.mxu0 %v3724_v6  ;;  %1248 = vmatprep.subr.bf16.mxu1 %v3733_v7 }
 0x423   :  { %v1033_v16 = vpop.f32.mrf.mxu0  ;;  %v1074_v39 = vpop.f32.mrf.mxu1 }
 0x424   :  { %v1034_v50 = vadd.f32 %v1033_v16, %v837_v2  ;;  %v1075_v35 = vadd.f32 %v1074_v39, %v4061_v31 }
 0x425   :  { %v1035_v49 = vpop.f32.mrf.mxu0  ;;  %v1076_v46 = vpop.f32.mrf.mxu1 }
 0x426   :  { %v1081_v61 = vadd.f32 %v1034_v50, %v4014_v40  ;;  %v1036_v8 = vadd.f32 %v1035_v49, %v4063_v58  ;;  %v1077_v36 = vadd.f32 %v1076_v46, %v4065_v15  ;;  %v1083_v58 = vadd.f32 %v1075_v35, %v4029_v53 }
 0x427   :  { %v1037_v44 = vpop.f32.mrf.mxu0  ;;  %v1078_v47 = vpop.f32.mrf.mxu1 }
 0x428   :  { %v3103_v32 = vmul.f32 -1.442695, %v1081_v61  ;;  %v1082_v51 = vadd.f32 %v1036_v8, %v4018_v34  ;;  %v1084_v2 = vadd.f32 %v1077_v36, %v4024_v57 }
 0x429   :  { %v1038_v29 = vpop.f32.mrf.mxu0  ;;  %v1079_v62 = vpop.f32.mrf.mxu1 }
 0x42a   :  { %3301 = vpow2.f32 %v3103_v32  ;;  %v3104_v54 = vmul.f32 -1.442695, %v1082_v51  ;;  %v3105_v17 = vmul.f32 -1.442695, %v1084_v2 }
 0x42c   :  { %3303 = vpow2.f32 %v3104_v54 }
 0x42d   :  { %3305 = vpow2.f32 %v3105_v17 }
 0x437   :  { %v3302_v48 = vpop.eup %3301 }
 0x438   :  { %v1088_v42 = vadd.f32 1.0, %v3302_v48 }
 0x439   :  { %v3304_v27 = vpop.eup %3303 }
 0x43a   :  { %3307 = vrcp.f32 %v1088_v42  ;;  %v1094_v16 = vadd.f32 1.0, %v3304_v27  ;;  %v3306_v50 = vpop.eup %3305 }
 0x43b   :  { %3309 = vtanh.f32 %v1083_v58  ;;  %v1101_v15 = vadd.f32 1.0, %v3306_v50 }
 0x43c   :  { %3311 = vrcp.f32 %v1094_v16 }
 0x43d   :  { %3313 = vrcp.f32 %v1101_v15 }
 0x447   :  { %v3308_v49 = vpop.eup %3307 }
 0x448   :  { %v3310_v61 = vpop.eup %3309 }
 0x449   :  { %v3312_v8 = vpop.eup %3311  ;;  %v1105_v46 = vmul.f32 %v3310_v61, %v3308_v49 }
 0x44a   :  { %v1104_v44 = vmul.f32 %v3312_v8, %v4032_v0  ;;  %v3314_v39 = vpop.eup %3313 }
 0x44c   :  { %v4099_v31 = vadd.f32 %v1105_v46, %v1104_v44 }
 0x44e   :  { %3315 = vtanh.f32 %v4099_v31 }
 0x45b   :  { %v3316_v47 = vpop.eup %3315 }
 0x45c   :  { %v1108_v32 = vmul.f32 %v3316_v47, %v3314_v39 }
 0x45e   :  { %v1109_v51 = vpack.c.bf16 %v1108_v32, %v1108_v32 }
 0x460   :  { %3106 = vmatmul.mubr.msk.bf16.vlgmr.msra.gmra.mxu0 %vm495_vm1, %v1109_v51  ;;  %3107 = vmatmul.mubr.msk.bf16.vlgmr.msra.gmra.mxu1 %vm495_vm1, %v1109_v51 }
 0x461   :  { %1208 = vmatpush1.bf16.msra.mxu0 %v3742_v9  ;;  %1249 = vmatpush1.bf16.msra.mxu1 %v3753_v11 }
 0x462   :  { %1209 = vmatprep.subr.bf16.mxu0 %v3747_v10  ;;  %1250 = vmatprep.subr.bf16.mxu1 %v3758_v12 }
 0x463   :  { %1227 = vmatprep.mubr.bf16.mxu0 %v4620_v33  ;;  %1268 = vmatprep.mubr.bf16.mxu1 %v4620_v33 }
 0x465   :  { %1210 = vmatpush1.bf16.msra.mxu0 %v3763_v13  ;;  %1251 = vmatpush1.bf16.msra.mxu1 %v3772_v14 }
 0x466   :  { %1321 = vmatprep.subr.bf16.mxu0 %v3808_v18  ;;  %1362 = vmatprep.subr.bf16.mxu1 %v3813_v19 }
 0x468   :  { %3108 = vmatmul.mubr.msk.bf16.vlgmr.msra.gmra.mxu0 %vm495_vm1, %v4075_v43  ;;  %3109 = vmatmul.mubr.msk.bf16.vlgmr.msra.gmra.mxu1 %vm495_vm1, %v4075_v43 }
 0x469   :  { %1322 = vmatpush1.bf16.msra.mxu0 %v3818_v20  ;;  %1363 = vmatpush1.bf16.msra.mxu1 %v3823_v21 }
 0x46a   :  { %1323 = vmatprep.subr.bf16.mxu0 %v3828_v22  ;;  %1364 = vmatprep.subr.bf16.mxu1 %v3833_v23 }
 0x46b   :  { %1341 = vmatprep.mubr.bf16.mxu0 %v4620_v33  ;;  %1382 = vmatprep.mubr.bf16.mxu1 %v4620_v33 }
 0x46d   :  { %1324 = vmatpush1.bf16.msra.mxu0 %v3842_v24  ;;  %1365 = vmatpush1.bf16.msra.mxu1 %v3847_v25 }
 0x46e   :  { %1435 = vmatprep.subr.bf16.mxu0 %v3986_v3  ;;  %1476 = vmatprep.subr.bf16.mxu1 %v3988_v28 }
 0x520   :  { %v1147_v9 = vpop.f32.mrf.mxu0  ;;  %v4128_v10 = vpop.f32.mrf.mxu1 }
 0x522   :  { %v4130_v11 = vpop.f32.mrf.mxu0  ;;  %v4132_v12 = vpop.f32.mrf.mxu1 }
 0x524   :  { %v1151_v0 = vpop.f32.mrf.mxu0  ;;  %v1192_v43 = vpop.f32.mrf.mxu1 }
 0x526   :  { %v1152_v29 = vpop.f32.mrf.mxu0  ;;  %v1193_v62 = vpop.f32.mrf.mxu1 }
 0x528   :  { %v1229_v54 = vpop.f32.mrf.mxu0  ;;  %v1270_v36 = vpop.f32.mrf.mxu1 }
 0x529   :  { %v1277_v2 = vadd.f32 %v1229_v54, %v3896_v55  ;;  %v1279_v8 = vadd.f32 %v1270_v36, %v3899_v56 }
 0x52a   :  { %v1231_v35 = vpop.f32.mrf.mxu0  ;;  %v1272_v17 = vpop.f32.mrf.mxu1 }
 0x52b   :  { %v3110_v48 = vmul.f32 -1.442695, %v1277_v2  ;;  %v1278_v58 = vadd.f32 %v1231_v35, %v3902_v59  ;;  %v1280_v61 = vadd.f32 %v1272_v17, %v3905_v60 }
 0x52c   :  { %v1233_v42 = vpop.f32.mrf.mxu0  ;;  %v1274_v27 = vpop.f32.mrf.mxu1 }
 0x52d   :  { %3317 = vpow2.f32 %v3110_v48  ;;  %v3111_v16 = vmul.f32 -1.442695, %v1278_v58  ;;  %v3112_v15 = vmul.f32 -1.442695, %v1280_v61 }
 0x52e   :  { %v1234_v50 = vpop.f32.mrf.mxu0  ;;  %v1275_v49 = vpop.f32.mrf.mxu1 }
 0x52f   :  { %3319 = vpow2.f32 %v3111_v16 }
 0x530   :  { %3321 = vtanh.f32 %v1279_v8 }
 0x531   :  { %3323 = vpow2.f32 %v3112_v15 }
 0x53a   :  { %v3318_v46 = vpop.eup %3317 }
 0x53b   :  { %v1284_v44 = vadd.f32 1.0, %v3318_v46 }
 0x53c   :  { %v3320_v55 = vpop.eup %3319 }
 0x53d   :  { %3325 = vrcp.f32 %v1284_v44  ;;  %v1290_v39 = vadd.f32 1.0, %v3320_v55  ;;  %v3322_v59 = vpop.eup %3321 }
 0x53e   :  { %v3324_v47 = vpop.eup %3323 }
 0x53f   :  { %3327 = vrcp.f32 %v1290_v39  ;;  %v1297_v43 = vadd.f32 1.0, %v3324_v47 }
 0x541   :  { %3329 = vrcp.f32 %v1297_v43 }
 0x54a   :  { %v3326_v32 = vpop.eup %3325 }
 0x54b   :  { %v1301_v51 = vmul.f32 %v3326_v32, %v3322_v59 }
 0x54c   :  { %v3328_v0 = vpop.eup %3327 }
 0x54d   :  { %v1300_v29 = vmul.f32 %v3328_v0, %v4072_v52 }
 0x54e   :  { %v3330_v56 = vpop.eup %3329 }
 0x54f   :  { %v4139_v60 = vadd.f32 %v1301_v51, %v1300_v29 }
 0x551   :  { %3331 = vtanh.f32 %v4139_v60 }
 0x55e   :  { %v3332_v62 = vpop.eup %3331 }
 0x55f   :  { %v1304_v54 = vmul.f32 %v3332_v62, %v3330_v56 }
 0x561   :  { %v4142_v36 = vpack.c.bf16 %v1304_v54, %v1304_v54 }
 0x563   :  { %3113 = vmatmul.mubr.msk.bf16.vlgmr.msra.gmra.mxu0 %vm495_vm1, %v4142_v36  ;;  %3114 = vmatmul.mubr.msk.bf16.vlgmr.msra.gmra.mxu1 %vm495_vm1, %v4142_v36 }
 0x564   :  { %1436 = vmatpush1.bf16.msra.mxu0 %v3990_v38  ;;  %1477 = vmatpush1.bf16.msra.mxu1 %v3992_v41 }
 0x565   :  { %1437 = vmatprep.subr.bf16.mxu0 %v3994_v30  ;;  %1478 = vmatprep.subr.bf16.mxu1 %v3996_v37 }
 0x566   :  { %1455 = vmatprep.mubr.bf16.mxu0 %v4620_v33  ;;  %1496 = vmatprep.mubr.bf16.mxu1 %v4620_v33 }
 0x568   :  { %1438 = vmatpush1.bf16.msra.mxu0 %v4002_v45  ;;  %1479 = vmatpush1.bf16.msra.mxu1 %v4004_v26 }
 0x569   :  { %1517 = vmatprep.subr.bf16.mxu0 %v3724_v6  ;;  %1558 = vmatprep.subr.bf16.mxu1 %v3733_v7 }
 0x623   :  { %v1343_v52 = vpop.f32.mrf.mxu0  ;;  %v1384_v2 = vpop.f32.mrf.mxu1 }
 0x624   :  { %v1344_v35 = vadd.f32 %v1343_v52, %v1147_v9  ;;  %v1385_v15 = vadd.f32 %v1384_v2, %v4128_v10  ;;  %v4174_v2 = vld [vmem:[%s4590_s2 + $0x20] ss:$16 sps:$4 sm:$0xff]  }
 0x625   :  { %v1345_v17 = vpop.f32.mrf.mxu0  ;;  %v1386_v48 = vpop.f32.mrf.mxu1 }
 0x626   :  { %v1391_v58 = vadd.f32 %v1344_v35, %v4014_v40  ;;  %v1346_v42 = vadd.f32 %v1345_v17, %v4130_v11  ;;  %v1387_v7 = vadd.f32 %v1386_v48, %v4132_v12  ;;  %v1393_v11 = vadd.f32 %v1385_v15, %v4029_v53  ;;  %v4186_v35 = vld [vmem:[%s4590_s2 + $0x4] ss:$16 sps:$4 sm:$0xff]   ;;  %v4192_v17 = vld [vmem:[%s4590_s2 + $0xc] ss:$16 sps:$4 sm:$0xff]  }
 0x627   :  { %v1347_v27 = vpop.f32.mrf.mxu0  ;;  %v1388_v16 = vpop.f32.mrf.mxu1 }
 0x628   :  { %v3115_v50 = vmul.f32 -1.442695, %v1391_v58  ;;  %v1392_v49 = vadd.f32 %v1346_v42, %v4018_v34  ;;  %v1394_v9 = vadd.f32 %v1387_v7, %v4024_v57 }
 0x629   :  { %v1348_v61 = vpop.f32.mrf.mxu0  ;;  %v1389_v8 = vpop.f32.mrf.mxu1 }
 0x62a   :  { %3333 = vpow2.f32 %v3115_v50  ;;  %v3116_v6 = vmul.f32 -1.442695, %v1392_v49  ;;  %v3117_v46 = vmul.f32 -1.442695, %v1394_v9 }
 0x62c   :  { %3335 = vpow2.f32 %v3116_v6 }
 0x62d   :  { %3337 = vpow2.f32 %v3117_v46 }
 0x637   :  { %v3334_v44 = vpop.eup %3333 }
 0x638   :  { %v1398_v55 = vadd.f32 1.0, %v3334_v44 }
 0x639   :  { %v3336_v39 = vpop.eup %3335 }
 0x63a   :  { %3339 = vrcp.f32 %v1398_v55  ;;  %v1404_v59 = vadd.f32 1.0, %v3336_v39  ;;  %v3338_v47 = vpop.eup %3337 }
 0x63b   :  { %3341 = vtanh.f32 %v1393_v11  ;;  %v1411_v12 = vadd.f32 1.0, %v3338_v47 }
 0x63c   :  { %3343 = vrcp.f32 %v1404_v59 }
 0x63d   :  { %3345 = vrcp.f32 %v1411_v12 }
 0x647   :  { %v3340_v32 = vpop.eup %3339 }
 0x648   :  { %v3342_v51 = vpop.eup %3341 }
 0x649   :  { %v3344_v0 = vpop.eup %3343  ;;  %v1415_v43 = vmul.f32 %v3342_v51, %v3340_v32 }
 0x64a   :  { %v1414_v29 = vmul.f32 %v3344_v0, %v4099_v31  ;;  %v3346_v56 = vpop.eup %3345  ;;  %v4180_v31 = vld [vmem:[%s4590_s2 + $0x28] ss:$16 sps:$4 sm:$0xff]  }
 0x64c   :  { %v4166_v10 = vadd.f32 %v1415_v43, %v1414_v29  ;;  %v4254_v43 = vld [vmem:[%s4590_s2 + $0x2c] ss:$16 sps:$4 sm:$0xff]  }
 0x64e   :  { %3347 = vtanh.f32 %v4166_v10 }
 0x65b   :  { %v3348_v62 = vpop.eup %3347 }
 0x65c   :  { %v1418_v54 = vmul.f32 %v3348_v62, %v3346_v56 }
 0x65e   :  { %v1419_v52 = vpack.c.bf16 %v1418_v54, %v1418_v54 }
 0x660   :  { %3118 = vmatmul.mubr.msk.bf16.vlgmr.msra.gmra.mxu0 %vm495_vm1, %v1419_v52  ;;  %3119 = vmatmul.mubr.msk.bf16.vlgmr.msra.gmra.mxu1 %vm495_vm1, %v1419_v52 }
 0x661   :  { %1518 = vmatpush1.bf16.msra.mxu0 %v4174_v2  ;;  %1559 = vmatpush1.bf16.msra.mxu1 %v4180_v31 }
 0x662   :  { %1519 = vmatprep.subr.bf16.mxu0 %v4186_v35  ;;  %1560 = vmatprep.subr.bf16.mxu1 %v4192_v17 }
 0x663   :  { %1537 = vmatprep.mubr.bf16.mxu0 %v4620_v33  ;;  %1578 = vmatprep.mubr.bf16.mxu1 %v4620_v33 }
 0x665   :  { %1520 = vmatpush1.bf16.msra.mxu0 %v3763_v13  ;;  %1561 = vmatpush1.bf16.msra.mxu1 %v3772_v14 }
 0x666   :  { %1631 = vmatprep.subr.bf16.mxu0 %v3808_v18  ;;  %1672 = vmatprep.subr.bf16.mxu1 %v3813_v19 }
 0x668   :  { %3120 = vmatmul.mubr.msk.bf16.vlgmr.msra.gmra.mxu0 %vm495_vm1, %v4142_v36  ;;  %3121 = vmatmul.mubr.msk.bf16.vlgmr.msra.gmra.mxu1 %vm495_vm1, %v4142_v36 }
 0x669   :  { %1632 = vmatpush1.bf16.msra.mxu0 %v3818_v20  ;;  %1673 = vmatpush1.bf16.msra.mxu1 %v3823_v21 }
 0x66a   :  { %1633 = vmatprep.subr.bf16.mxu0 %v3828_v22  ;;  %1674 = vmatprep.subr.bf16.mxu1 %v3833_v23 }
 0x66b   :  { %1651 = vmatprep.mubr.bf16.mxu0 %v4620_v33  ;;  %1692 = vmatprep.mubr.bf16.mxu1 %v4620_v33 }
 0x66d   :  { %1634 = vmatpush1.bf16.msra.mxu0 %v3842_v24  ;;  %1675 = vmatpush1.bf16.msra.mxu1 %v3847_v25 }
 0x66e   :  { %1745 = vmatprep.subr.bf16.mxu0 %v3986_v3  ;;  %1786 = vmatprep.subr.bf16.mxu1 %v3988_v28 }
 0x720   :  { %v4215_v13 = vpop.f32.mrf.mxu0  ;;  %v4217_v14 = vpop.f32.mrf.mxu1 }
 0x722   :  { %v4219_v18 = vpop.f32.mrf.mxu0  ;;  %v4221_v19 = vpop.f32.mrf.mxu1 }
 0x724   :  { %v1461_v20 = vpop.f32.mrf.mxu0  ;;  %v1502_v21 = vpop.f32.mrf.mxu1 }
 0x726   :  { %v1462_v22 = vpop.f32.mrf.mxu0  ;;  %v1503_v23 = vpop.f32.mrf.mxu1 }
 0x728   :  { %v1539_v36 = vpop.f32.mrf.mxu0  ;;  %v1580_v24 = vpop.f32.mrf.mxu1 }
 0x729   :  { %v1587_v25 = vadd.f32 %v1539_v36, %v3908_v63  ;;  %v1589_v7 = vadd.f32 %v1580_v24, %v3911_v1 }
 0x72a   :  { %v1541_v48 = vpop.f32.mrf.mxu0  ;;  %v1582_v58 = vpop.f32.mrf.mxu1 }
 0x72b   :  { %v3122_v42 = vmul.f32 -1.442695, %v1587_v25  ;;  %v1588_v27 = vadd.f32 %v1541_v48, %v3914_v4  ;;  %v1590_v6 = vadd.f32 %v1582_v58, %v3917_v5 }
 0x72c   :  { %v1543_v16 = vpop.f32.mrf.mxu0  ;;  %v1584_v50 = vpop.f32.mrf.mxu1 }
 0x72d   :  { %3349 = vpow2.f32 %v3122_v42  ;;  %v3123_v49 = vmul.f32 -1.442695, %v1588_v27  ;;  %v3124_v9 = vmul.f32 -1.442695, %v1590_v6 }
 0x72e   :  { %v1544_v61 = vpop.f32.mrf.mxu0  ;;  %v1585_v8 = vpop.f32.mrf.mxu1 }
 0x72f   :  { %3351 = vpow2.f32 %v3123_v49 }
 0x730   :  { %3353 = vtanh.f32 %v1589_v7 }
 0x731   :  { %3355 = vpow2.f32 %v3124_v9 }
 0x73a   :  { %v3350_v15 = vpop.eup %3349 }
 0x73b   :  { %v1594_v46 = vadd.f32 1.0, %v3350_v15 }
 0x73c   :  { %v3352_v63 = vpop.eup %3351 }
 0x73d   :  { %3357 = vrcp.f32 %v1594_v46  ;;  %v1600_v44 = vadd.f32 1.0, %v3352_v63  ;;  %v3354_v4 = vpop.eup %3353 }
 0x73e   :  { %v3356_v11 = vpop.eup %3355 }
 0x73f   :  { %3359 = vrcp.f32 %v1600_v44  ;;  %v1607_v47 = vadd.f32 1.0, %v3356_v11 }
 0x741   :  { %3361 = vrcp.f32 %v1607_v47  ;;  %v4298_v47 = vld [vmem:[%s4592_s4 + $0x2c] ss:$16 sps:$4 sm:$0xff]  }
 0x74a   :  { %v3358_v55 = vpop.eup %3357 }
 0x74b   :  { %v1611_v39 = vmul.f32 %v3358_v55, %v3354_v4 }
 0x74c   :  { %v3360_v59 = vpop.eup %3359 }
 0x74d   :  { %v1610_v32 = vmul.f32 %v3360_v59, %v4139_v60  ;;  %v4248_v60 = vld [vmem:[%s4590_s2 + $0x24] ss:$16 sps:$4 sm:$0xff]  }
 0x74e   :  { %v3362_v1 = vpop.eup %3361  ;;  %v4292_v59 = vld [vmem:[%s4592_s4 + $0x24] ss:$16 sps:$4 sm:$0xff]  }
 0x74f   :  { %v4228_v5 = vadd.f32 %v1611_v39, %v1610_v32  ;;  %v4286_v39 = vld [vmem:[%s4590_s2 + $0x8] ss:$16 sps:$4 sm:$0xff]   ;;  %v4308_v32 = vld [vmem:[%s4592_s4 + $0x20] ss:$16 sps:$4 sm:$0xff]  }
 0x751   :  { %3363 = vtanh.f32 %v4228_v5 }
 0x75e   :  { %v3364_v51 = vpop.eup %3363 }
 0x75f   :  { %v1614_v0 = vmul.f32 %v3364_v51, %v3362_v1  ;;  %v4314_v1 = vld [vmem:[%s4592_s4 + $0x28] ss:$16 sps:$4 sm:$0xff]   ;;  %v4320_v51 = vld [vmem:[%s4592_s4 + $0x4] ss:$16 sps:$4 sm:$0xff]  }
 0x761   :  { %v4231_v12 = vpack.c.bf16 %v1614_v0, %v1614_v0  ;;  %v4326_v0 = vld [vmem:[%s4592_s4 + $0xc] ss:$16 sps:$4 sm:$0xff]  }
 0x763   :  { %3125 = vmatmul.mubr.msk.bf16.vlgmr.msra.gmra.mxu0 %vm495_vm1, %v4231_v12  ;;  %3126 = vmatmul.mubr.msk.bf16.vlgmr.msra.gmra.mxu1 %vm495_vm1, %v4231_v12 }
 0x764   :  { %1746 = vmatpush1.bf16.msra.mxu0 %v3990_v38  ;;  %1787 = vmatpush1.bf16.msra.mxu1 %v3992_v41 }
 0x765   :  { %1747 = vmatprep.subr.bf16.mxu0 %v3994_v30  ;;  %1788 = vmatprep.subr.bf16.mxu1 %v3996_v37 }
 0x766   :  { %1765 = vmatprep.mubr.bf16.mxu0 %v4620_v33  ;;  %1806 = vmatprep.mubr.bf16.mxu1 %v4620_v33 }
 0x768   :  { %1748 = vmatpush1.bf16.msra.mxu0 %v4002_v45  ;;  %1789 = vmatpush1.bf16.msra.mxu1 %v4004_v26 }
 0x769   :  { %1827 = vmatprep.subr.bf16.mxu0 %v4248_v60  ;;  %1868 = vmatprep.subr.bf16.mxu1 %v4254_v43 }
 0x823   :  { %v1653_v29 = vpop.f32.mrf.mxu0  ;;  %v1694_v56 = vpop.f32.mrf.mxu1 }
 0x824   :  { %v1654_v62 = vadd.f32 %v1653_v29, %v4215_v13  ;;  %v1695_v27 = vadd.f32 %v1694_v56, %v4217_v14  ;;  %v4340_v29 = vld [vmem:[%s4592_s4 + $0x8] ss:$16 sps:$4 sm:$0xff]  }
 0x825   :  { %v1655_v54 = vpop.f32.mrf.mxu0  ;;  %v1696_v52 = vpop.f32.mrf.mxu1 }
 0x826   :  { %v1701_v20 = vadd.f32 %v1654_v62, %v4014_v40  ;;  %v1656_v21 = vadd.f32 %v1655_v54, %v4219_v18  ;;  %v1697_v42 = vadd.f32 %v1696_v52, %v4221_v19  ;;  %v1703_v18 = vadd.f32 %v1695_v27, %v4029_v53 }
 0x827   :  { %v1657_v22 = vpop.f32.mrf.mxu0  ;;  %v1698_v23 = vpop.f32.mrf.mxu1 }
 0x828   :  { %v3127_v36 = vmul.f32 -1.442695, %v1701_v20  ;;  %v1702_v24 = vadd.f32 %v1656_v21, %v4018_v34  ;;  %v1704_v13 = vadd.f32 %v1697_v42, %v4024_v57 }
 0x829   :  { %v1658_v25 = vpop.f32.mrf.mxu0  ;;  %v1699_v48 = vpop.f32.mrf.mxu1 }
 0x82a   :  { %3365 = vpow2.f32 %v3127_v36  ;;  %v3128_v58 = vmul.f32 -1.442695, %v1702_v24  ;;  %v3129_v16 = vmul.f32 -1.442695, %v1704_v13  ;;  %v4625_v25 = vld [vmem:[#allocation13_spill] sm:$0xff]  ;;  %v4626_v13 = vld [vmem:[#allocation15_spill] sm:$0xff] }
 0x82c   :  { %3367 = vpow2.f32 %v3128_v58 }
 0x82d   :  { %3369 = vpow2.f32 %v3129_v16 }
 0x837   :  { %v3366_v50 = vpop.eup %3365 }
 0x838   :  { %v1708_v49 = vadd.f32 1.0, %v3366_v50 }
 0x839   :  { %v3368_v61 = vpop.eup %3367 }
 0x83a   :  { %3371 = vrcp.f32 %v1708_v49  ;;  %v1714_v8 = vadd.f32 1.0, %v3368_v61  ;;  %v3370_v6 = vpop.eup %3369  ;;  %v4627_v61 = vld [vmem:[#allocation16_spill] sm:$0xff] }
 0x83b   :  { %3373 = vtanh.f32 %v1703_v18  ;;  %v1721_v19 = vadd.f32 1.0, %v3370_v6  ;;  %v4628_v6 = vld [vmem:[#allocation14_spill] sm:$0xff] }
 0x83c   :  { %3375 = vrcp.f32 %v1714_v8 }
 0x83d   :  { %3377 = vrcp.f32 %v1721_v19 }
 0x847   :  { %v3372_v7 = vpop.eup %3371 }
 0x848   :  { %v3374_v9 = vpop.eup %3373 }
 0x849   :  { %v3376_v15 = vpop.eup %3375  ;;  %v1725_v46 = vmul.f32 %v3374_v9, %v3372_v7 }
 0x84a   :  { %v1724_v63 = vmul.f32 %v3376_v15, %v4166_v10  ;;  %v3378_v44 = vpop.eup %3377  ;;  %v4280_v10 = vld [vmem:[%s4590_s2] ss:$16 sps:$4 sm:$0xff]  }
 0x84c   :  { %v4266_v14 = vadd.f32 %v1725_v46, %v1724_v63 }
 0x84e   :  { %3379 = vtanh.f32 %v4266_v14 }
 0x85b   :  { %v3380_v4 = vpop.eup %3379 }
 0x85c   :  { %v1728_v11 = vmul.f32 %v3380_v4, %v3378_v44 }
 0x85e   :  { %v1729_v55 = vpack.c.bf16 %v1728_v11, %v1728_v11 }
 0x860   :  { %3130 = vmatmul.mubr.msk.bf16.vlgmr.msra.gmra.mxu0 %vm495_vm1, %v1729_v55  ;;  %3131 = vmatmul.mubr.msk.bf16.vlgmr.msra.gmra.mxu1 %vm495_vm1, %v1729_v55 }
 0x861   :  { %1828 = vmatpush1.bf16.msra.mxu0 %v4174_v2  ;;  %1869 = vmatpush1.bf16.msra.mxu1 %v4180_v31 }
 0x862   :  { %1829 = vmatprep.subr.bf16.mxu0 %v4186_v35  ;;  %1870 = vmatprep.subr.bf16.mxu1 %v4192_v17 }
 0x863   :  { %1847 = vmatprep.mubr.bf16.mxu0 %v4620_v33  ;;  %1888 = vmatprep.mubr.bf16.mxu1 %v4620_v33 }
 0x865   :  { %1830 = vmatpush1.bf16.msra.mxu0 %v4280_v10  ;;  %1871 = vmatpush1.bf16.msra.mxu1 %v4286_v39 }
 0x866   :  { %1941 = vmatprep.subr.bf16.mxu0 %v4292_v59  ;;  %1982 = vmatprep.subr.bf16.mxu1 %v4298_v47 }
 0x868   :  { %3132 = vmatmul.mubr.msk.bf16.vlgmr.msra.gmra.mxu0 %vm495_vm1, %v4231_v12  ;;  %3133 = vmatmul.mubr.msk.bf16.vlgmr.msra.gmra.mxu1 %vm495_vm1, %v4231_v12  ;;  %v4334_v12 = vld [vmem:[%s4592_s4] ss:$16 sps:$4 sm:$0xff]  }
 0x869   :  { %1942 = vmatpush1.bf16.msra.mxu0 %v4308_v32  ;;  %1983 = vmatpush1.bf16.msra.mxu1 %v4314_v1 }
 0x86a   :  { %1943 = vmatprep.subr.bf16.mxu0 %v4320_v51  ;;  %1984 = vmatprep.subr.bf16.mxu1 %v4326_v0 }
 0x86b   :  { %1961 = vmatprep.mubr.bf16.mxu0 %v4620_v33  ;;  %2002 = vmatprep.mubr.bf16.mxu1 %v4620_v33 }
 0x86d   :  { %1944 = vmatpush1.bf16.msra.mxu0 %v4334_v12  ;;  %1985 = vmatpush1.bf16.msra.mxu1 %v4340_v29 }
 0x86e   :  { %2055 = vmatprep.subr.bf16.mxu0 %v3986_v3  ;;  %2096 = vmatprep.subr.bf16.mxu1 %v3988_v28 }
 0x920   :  { %v1767_v56 = vpop.f32.mrf.mxu0  ;;  %v4345_v62 = vpop.f32.mrf.mxu1 }
 0x922   :  { %v4347_v54 = vpop.f32.mrf.mxu0  ;;  %v4349_v52 = vpop.f32.mrf.mxu1 }
 0x924   :  { %v1771_v20 = vpop.f32.mrf.mxu0  ;;  %v1812_v21 = vpop.f32.mrf.mxu1 }
 0x926   :  { %v1772_v22 = vpop.f32.mrf.mxu0  ;;  %v1813_v23 = vpop.f32.mrf.mxu1 }
 0x928   :  { %v1849_v36 = vpop.f32.mrf.mxu0  ;;  %v1890_v24 = vpop.f32.mrf.mxu1 }
 0x929   :  { %v1897_v48 = vadd.f32 %v1849_v36, %v4625_v25  ;;  %v1899_v7 = vadd.f32 %v1890_v24, %v4628_v6 }
 0x92a   :  { %v1851_v58 = vpop.f32.mrf.mxu0  ;;  %v1892_v42 = vpop.f32.mrf.mxu1 }
 0x92b   :  { %v3134_v3 = vmul.f32 -1.442695, %v1897_v48  ;;  %v1898_v28 = vadd.f32 %v1851_v58, %v4626_v13  ;;  %v1900_v8 = vadd.f32 %v1892_v42, %v4627_v61 }
 0x92c   :  { %v1853_v27 = vpop.f32.mrf.mxu0  ;;  %v1894_v16 = vpop.f32.mrf.mxu1 }
 0x92d   :  { %3381 = vpow2.f32 %v3134_v3  ;;  %v3135_v50 = vmul.f32 -1.442695, %v1898_v28  ;;  %v3136_v9 = vmul.f32 -1.442695, %v1900_v8 }
 0x92e   :  { %v1854_v18 = vpop.f32.mrf.mxu0  ;;  %v1895_v49 = vpop.f32.mrf.mxu1 }
 0x92f   :  { %3383 = vpow2.f32 %v3135_v50 }
 0x930   :  { %3385 = vtanh.f32 %v1899_v7 }
 0x931   :  { %3387 = vpow2.f32 %v3136_v9 }
 0x93a   :  { %v3382_v15 = vpop.eup %3381 }
 0x93b   :  { %v1904_v19 = vadd.f32 1.0, %v3382_v15 }
 0x93c   :  { %v3384_v46 = vpop.eup %3383 }
 0x93d   :  { %3389 = vrcp.f32 %v1904_v19  ;;  %v1910_v63 = vadd.f32 1.0, %v3384_v46  ;;  %v3386_v44 = vpop.eup %3385 }
 0x93e   :  { %v3388_v4 = vpop.eup %3387 }
 0x93f   :  { %3391 = vrcp.f32 %v1910_v63  ;;  %v1917_v21 = vadd.f32 1.0, %v3388_v4 }
 0x941   :  { %3393 = vrcp.f32 %v1917_v21  ;;  %v4413_v21 = vld [vmem:[#allocation6 + $0x2c] ss:$16 sps:$4 sm:$0xff]  }
 0x94a   :  { %v3390_v11 = vpop.eup %3389 }
 0x94b   :  { %v1921_v55 = vmul.f32 %v3390_v11, %v3386_v44 }
 0x94c   :  { %v3392_v20 = vpop.eup %3391 }
 0x94d   :  { %v1920_v22 = vmul.f32 %v3392_v20, %v4228_v5 }
 0x94e   :  { %v3394_v36 = vpop.eup %3393 }
 0x94f   :  { %v4356_v23 = vadd.f32 %v1921_v55, %v1920_v22 }
 0x951   :  { %3395 = vtanh.f32 %v4356_v23 }
 0x95e   :  { %v3396_v24 = vpop.eup %3395 }
 0x95f   :  { %v1924_v25 = vmul.f32 %v3396_v24, %v3394_v36 }
 0x961   :  { %v4359_v48 = vpack.c.bf16 %v1924_v25, %v1924_v25 }
 0x963   :  { %3137 = vmatmul.mubr.msk.bf16.vlgmr.msra.gmra.mxu0 %vm495_vm1, %v4359_v48  ;;  %3138 = vmatmul.mubr.msk.bf16.vlgmr.msra.gmra.mxu1 %vm495_vm1, %v4359_v48 }
 0x964   :  { %2056 = vmatpush1.bf16.msra.mxu0 %v3990_v38  ;;  %2097 = vmatpush1.bf16.msra.mxu1 %v3992_v41 }
 0x965   :  { %2057 = vmatprep.subr.bf16.mxu0 %v3994_v30  ;;  %2098 = vmatprep.subr.bf16.mxu1 %v3996_v37 }
 0x966   :  { %2075 = vmatprep.mubr.bf16.mxu0 %v4620_v33  ;;  %2116 = vmatprep.mubr.bf16.mxu1 %v4620_v33 }
 0x968   :  { %2058 = vmatpush1.bf16.msra.mxu0 %v4002_v45  ;;  %2099 = vmatpush1.bf16.msra.mxu1 %v4004_v26 }
 0x969   :  { %2137 = vmatprep.subr.bf16.mxu0 %v4248_v60  ;;  %2178 = vmatprep.subr.bf16.mxu1 %v4254_v43 }
 0xa23   :  { %v1963_v5 = vpop.f32.mrf.mxu0  ;;  %v2004_v38 = vpop.f32.mrf.mxu1 }
 0xa24   :  { %v1964_v58 = vadd.f32 %v1963_v5, %v1767_v56  ;;  %v2005_v18 = vadd.f32 %v2004_v38, %v4345_v62 }
 0xa25   :  { %v1965_v41 = vpop.f32.mrf.mxu0  ;;  %v2006_v42 = vpop.f32.mrf.mxu1 }
 0xa26   :  { %v2011_v30 = vadd.f32 %v1964_v58, %v4014_v40  ;;  %v1966_v37 = vadd.f32 %v1965_v41, %v4347_v54  ;;  %v2007_v50 = vadd.f32 %v2006_v42, %v4349_v52  ;;  %v2013_v54 = vadd.f32 %v2005_v18, %v4029_v53 }
 0xa27   :  { %v1967_v3 = vpop.f32.mrf.mxu0  ;;  %v2008_v13 = vpop.f32.mrf.mxu1 }
 0xa28   :  { %v3139_v28 = vmul.f32 -1.442695, %v2011_v30  ;;  %v2012_v45 = vadd.f32 %v1966_v37, %v4018_v34  ;;  %v2014_v56 = vadd.f32 %v2007_v50, %v4024_v57  ;;  %v4629_v30 = vld [vmem:[#allocation17_spill] sm:$0xff] }
 0xa29   :  { %v1968_v27 = vpop.f32.mrf.mxu0  ;;  %v2009_v26 = vpop.f32.mrf.mxu1 }
 0xa2a   :  { %3397 = vpow2.f32 %v3139_v28  ;;  %v3140_v16 = vmul.f32 -1.442695, %v2012_v45  ;;  %v3141_v49 = vmul.f32 -1.442695, %v2014_v56  ;;  %v4630_v45 = vld [vmem:[#allocation19_spill] sm:$0xff] }
 0xa2c   :  { %3399 = vpow2.f32 %v3140_v16 }
 0xa2d   :  { %3401 = vpow2.f32 %v3141_v49  ;;  %v4631_v49 = vld [vmem:[#allocation20_spill] sm:$0xff] }
 0xa37   :  { %v3398_v61 = vpop.eup %3397 }
 0xa38   :  { %v2018_v8 = vadd.f32 1.0, %v3398_v61 }
 0xa39   :  { %v3400_v6 = vpop.eup %3399 }
 0xa3a   :  { %3403 = vrcp.f32 %v2018_v8  ;;  %v2024_v7 = vadd.f32 1.0, %v3400_v6  ;;  %v3402_v9 = vpop.eup %3401 }
 0xa3b   :  { %3405 = vtanh.f32 %v2013_v54  ;;  %v2031_v52 = vadd.f32 1.0, %v3402_v9  ;;  %v4632_v54 = vld [vmem:[#allocation18_spill] sm:$0xff] }
 0xa3c   :  { %3407 = vrcp.f32 %v2024_v7 }
 0xa3d   :  { %3409 = vrcp.f32 %v2031_v52 }
 0xa47   :  { %v3404_v15 = vpop.eup %3403 }
 0xa48   :  { %v3406_v19 = vpop.eup %3405 }
 0xa49   :  { %v3408_v46 = vpop.eup %3407  ;;  %v2035_v63 = vmul.f32 %v3406_v19, %v3404_v15 }
 0xa4a   :  { %v2034_v44 = vmul.f32 %v3408_v46, %v4266_v14  ;;  %v3410_v4 = vpop.eup %3409  ;;  %v4410_v14 = vld [vmem:[#allocation6 + $0x24] ss:$16 sps:$4 sm:$0xff]  }
 0xa4c   :  { %v4383_v62 = vadd.f32 %v2035_v63, %v2034_v44 }
 0xa4e   :  { %3411 = vtanh.f32 %v4383_v62 }
 0xa5b   :  { %v3412_v11 = vpop.eup %3411 }
 0xa5c   :  { %v2038_v55 = vmul.f32 %v3412_v11, %v3410_v4 }
 0xa5e   :  { %v2039_v20 = vpack.c.bf16 %v2038_v55, %v2038_v55 }
 0xa60   :  { %3142 = vmatmul.mubr.msk.bf16.vlgmr.msra.gmra.mxu0 %vm495_vm1, %v2039_v20  ;;  %3143 = vmatmul.mubr.msk.bf16.vlgmr.msra.gmra.mxu1 %vm495_vm1, %v2039_v20 }
 0xa61   :  { %2138 = vmatpush1.bf16.msra.mxu0 %v4174_v2  ;;  %2179 = vmatpush1.bf16.msra.mxu1 %v4180_v31 }
 0xa62   :  { %2139 = vmatprep.subr.bf16.mxu0 %v4186_v35  ;;  %2180 = vmatprep.subr.bf16.mxu1 %v4192_v17 }
 0xa63   :  { %2157 = vmatprep.mubr.bf16.mxu0 %v4620_v33  ;;  %2198 = vmatprep.mubr.bf16.mxu1 %v4620_v33 }
 0xa65   :  { %2140 = vmatpush1.bf16.msra.mxu0 %v4280_v10  ;;  %2181 = vmatpush1.bf16.msra.mxu1 %v4286_v39 }
 0xa66   :  { %2251 = vmatprep.subr.bf16.mxu0 %v4292_v59  ;;  %2292 = vmatprep.subr.bf16.mxu1 %v4298_v47 }
 0xa68   :  { %3144 = vmatmul.mubr.msk.bf16.vlgmr.msra.gmra.mxu0 %vm495_vm1, %v4359_v48  ;;  %3145 = vmatmul.mubr.msk.bf16.vlgmr.msra.gmra.mxu1 %vm495_vm1, %v4359_v48 }
 0xa69   :  { %2252 = vmatpush1.bf16.msra.mxu0 %v4308_v32  ;;  %2293 = vmatpush1.bf16.msra.mxu1 %v4314_v1 }
 0xa6a   :  { %2253 = vmatprep.subr.bf16.mxu0 %v4320_v51  ;;  %2294 = vmatprep.subr.bf16.mxu1 %v4326_v0 }
 0xa6b   :  { %2271 = vmatprep.mubr.bf16.mxu0 %v4620_v33  ;;  %2312 = vmatprep.mubr.bf16.mxu1 %v4620_v33 }
 0xa6d   :  { %2254 = vmatpush1.bf16.msra.mxu0 %v4334_v12  ;;  %2295 = vmatpush1.bf16.msra.mxu1 %v4340_v29 }
 0xa6e   :  { %2365 = vmatprep.subr.bf16.mxu0 %v4410_v14  ;;  %2406 = vmatprep.subr.bf16.mxu1 %v4413_v21 }
 0xb20   :  { %v4416_v22 = vpop.f32.mrf.mxu0  ;;  %v4418_v36 = vpop.f32.mrf.mxu1 }
 0xb22   :  { %v4420_v24 = vpop.f32.mrf.mxu0  ;;  %v4422_v25 = vpop.f32.mrf.mxu1 }
 0xb24   :  { %v2081_v48 = vpop.f32.mrf.mxu0  ;;  %v2122_v5 = vpop.f32.mrf.mxu1 }
 0xb26   :  { %v2082_v38 = vpop.f32.mrf.mxu0  ;;  %v2123_v58 = vpop.f32.mrf.mxu1 }
 0xb28   :  { %v2159_v41 = vpop.f32.mrf.mxu0  ;;  %v2200_v42 = vpop.f32.mrf.mxu1 }
 0xb29   :  { %v2207_v37 = vadd.f32 %v2159_v41, %v4629_v30  ;;  %v2209_v8 = vadd.f32 %v2200_v42, %v4632_v54  ;;  %v4438_v41 = vld [vmem:[#allocation6 + $0x20] ss:$16 sps:$4 sm:$0xff]   ;;  %v4444_v42 = vld [vmem:[#allocation6 + $0x4] ss:$16 sps:$4 sm:$0xff]   ;;  %v4447_v30 = vld [vmem:[#allocation6 + $0xc] ss:$16 sps:$4 sm:$0xff]  }
 0xb2a   :  { %v2161_v3 = vpop.f32.mrf.mxu0  ;;  %v2202_v13 = vpop.f32.mrf.mxu1 }
 0xb2b   :  { %v3146_v28 = vmul.f32 -1.442695, %v2207_v37  ;;  %v2208_v27 = vadd.f32 %v2161_v3, %v4630_v45  ;;  %v2210_v61 = vadd.f32 %v2202_v13, %v4631_v49  ;;  %v4452_v37 = vld [vmem:[#allocation6] ss:$16 sps:$4 sm:$0xff]   ;;  %v4455_v3 = vld [vmem:[#allocation6 + $0x8] ss:$16 sps:$4 sm:$0xff]  }
 0xb2c   :  { %v2163_v26 = vpop.f32.mrf.mxu0  ;;  %v2204_v16 = vpop.f32.mrf.mxu1 }
 0xb2d   :  { %3413 = vpow2.f32 %v3146_v28  ;;  %v3147_v50 = vmul.f32 -1.442695, %v2208_v27  ;;  %v3148_v6 = vmul.f32 -1.442695, %v2210_v61 }
 0xb2e   :  { %v2164_v56 = vpop.f32.mrf.mxu0  ;;  %v2205_v18 = vpop.f32.mrf.mxu1 }
 0xb2f   :  { %3415 = vpow2.f32 %v3147_v50 }
 0xb30   :  { %3417 = vtanh.f32 %v2209_v8 }
 0xb31   :  { %3419 = vpow2.f32 %v3148_v6 }
 0xb3a   :  { %v3414_v7 = vpop.eup %3413 }
 0xb3b   :  { %v2214_v9 = vadd.f32 1.0, %v3414_v7 }
 0xb3c   :  { %v3416_v15 = vpop.eup %3415 }
 0xb3d   :  { %3421 = vrcp.f32 %v2214_v9  ;;  %v2220_v19 = vadd.f32 1.0, %v3416_v15  ;;  %v3418_v46 = vpop.eup %3417 }
 0xb3e   :  { %v3420_v52 = vpop.eup %3419 }
 0xb3f   :  { %3423 = vrcp.f32 %v2220_v19  ;;  %v2227_v11 = vadd.f32 1.0, %v3420_v52 }
 0xb41   :  { %3425 = vrcp.f32 %v2227_v11 }
 0xb4a   :  { %v3422_v63 = vpop.eup %3421 }
 0xb4b   :  { %v2231_v44 = vmul.f32 %v3422_v63, %v3418_v46 }
 0xb4c   :  { %v3424_v4 = vpop.eup %3423 }
 0xb4d   :  { %v2230_v55 = vmul.f32 %v3424_v4, %v4356_v23  ;;  %v4441_v23 = vld [vmem:[#allocation6 + $0x28] ss:$16 sps:$4 sm:$0xff]  }
 0xb4e   :  { %v3426_v48 = vpop.eup %3425 }
 0xb4f   :  { %v4429_v20 = vadd.f32 %v2231_v44, %v2230_v55 }
 0xb51   :  { %3427 = vtanh.f32 %v4429_v20 }
 0xb5e   :  { %v3428_v5 = vpop.eup %3427 }
 0xb5f   :  { %v2234_v38 = vmul.f32 %v3428_v5, %v3426_v48 }
 0xb61   :  { %v4432_v58 = vpack.c.bf16 %v2234_v38, %v2234_v38 }
 0xb63   :  { %3149 = vmatmul.mubr.msk.bf16.vlgmr.msra.gmra.mxu0 %vm495_vm1, %v4432_v58  ;;  %3150 = vmatmul.mubr.msk.bf16.vlgmr.msra.gmra.mxu1 %vm495_vm1, %v4432_v58 }
 0xb64   :  { %2366 = vmatpush1.bf16.msra.mxu0 %v4438_v41  ;;  %2407 = vmatpush1.bf16.msra.mxu1 %v4441_v23 }
 0xb65   :  { %2367 = vmatprep.subr.bf16.mxu0 %v4444_v42  ;;  %2408 = vmatprep.subr.bf16.mxu1 %v4447_v30 }
 0xb66   :  { %2385 = vmatprep.mubr.bf16.mxu0 %v4620_v33  ;;  %2426 = vmatprep.mubr.bf16.mxu1 %v4620_v33 }
 0xb68   :  { %2368 = vmatpush1.bf16.msra.mxu0 %v4452_v37  ;;  %2409 = vmatpush1.bf16.msra.mxu1 %v4455_v3 }
 0xb69   :  { %2447 = vmatprep.subr.bf16.mxu0 %v4248_v60  ;;  %2488 = vmatprep.subr.bf16.mxu1 %v4254_v43 }
 0xc23   :  { %v2273_v13 = vpop.f32.mrf.mxu0  ;;  %v2314_v28 = vpop.f32.mrf.mxu1 }
 0xc24   :  { %v2274_v45 = vadd.f32 %v2273_v13, %v4416_v22  ;;  %v2315_v9 = vadd.f32 %v2314_v28, %v4418_v36 }
 0xc25   :  { %v2275_v27 = vpop.f32.mrf.mxu0  ;;  %v2316_v26 = vpop.f32.mrf.mxu1 }
 0xc26   :  { %v2321_v16 = vadd.f32 %v2274_v45, %v4014_v40  ;;  %v2276_v50 = vadd.f32 %v2275_v27, %v4420_v24  ;;  %v2317_v7 = vadd.f32 %v2316_v26, %v4422_v25  ;;  %v2323_v24 = vadd.f32 %v2315_v9, %v4029_v53 }
 0xc27   :  { %v2277_v56 = vpop.f32.mrf.mxu0  ;;  %v2318_v18 = vpop.f32.mrf.mxu1 }
 0xc28   :  { %v3151_v49 = vmul.f32 -1.442695, %v2321_v16  ;;  %v2322_v61 = vadd.f32 %v2276_v50, %v4018_v34  ;;  %v2324_v22 = vadd.f32 %v2317_v7, %v4024_v57 }
 0xc29   :  { %v2278_v54 = vpop.f32.mrf.mxu0  ;;  %v2319_v8 = vpop.f32.mrf.mxu1 }
 0xc2a   :  { %3429 = vpow2.f32 %v3151_v49  ;;  %v3152_v6 = vmul.f32 -1.442695, %v2322_v61  ;;  %v3153_v15 = vmul.f32 -1.442695, %v2324_v22  ;;  %v4633_v54 = vld [vmem:[#allocation21_spill] sm:$0xff]  ;;  %v4634_v22 = vld [vmem:[#allocation23_spill] sm:$0xff] }
 0xc2c   :  { %3431 = vpow2.f32 %v3152_v6 }
 0xc2d   :  { %3433 = vpow2.f32 %v3153_v15 }
 0xc37   :  { %v3430_v19 = vpop.eup %3429 }
 0xc38   :  { %v2328_v46 = vadd.f32 1.0, %v3430_v19 }
 0xc39   :  { %v3432_v52 = vpop.eup %3431 }
 0xc3a   :  { %3435 = vrcp.f32 %v2328_v46  ;;  %v2334_v63 = vadd.f32 1.0, %v3432_v52  ;;  %v3434_v44 = vpop.eup %3433  ;;  %v4635_v52 = vld [vmem:[#allocation24_spill] sm:$0xff] }
 0xc3b   :  { %3437 = vtanh.f32 %v2323_v24  ;;  %v2341_v25 = vadd.f32 1.0, %v3434_v44  ;;  %v4636_v44 = vld [vmem:[#allocation22_spill] sm:$0xff] }
 0xc3c   :  { %3439 = vrcp.f32 %v2334_v63 }
 0xc3d   :  { %3441 = vrcp.f32 %v2341_v25 }
 0xc47   :  { %v3436_v4 = vpop.eup %3435 }
 0xc48   :  { %v3438_v11 = vpop.eup %3437 }
 0xc49   :  { %v3440_v55 = vpop.eup %3439  ;;  %v2345_v48 = vmul.f32 %v3438_v11, %v3436_v4 }
 0xc4a   :  { %v2344_v5 = vmul.f32 %v3440_v55, %v4383_v62  ;;  %v3442_v38 = vpop.eup %3441 }
 0xc4c   :  { %v4469_v36 = vadd.f32 %v2345_v48, %v2344_v5 }
 0xc4e   :  { %3443 = vtanh.f32 %v4469_v36 }
 0xc5b   :  { %v3444_v13 = vpop.eup %3443 }
 0xc5c   :  { %v2348_v28 = vmul.f32 %v3444_v13, %v3442_v38 }
 0xc5e   :  { %v2349_v45 = vpack.c.bf16 %v2348_v28, %v2348_v28 }
 0xc60   :  { %3154 = vmatmul.mubr.msk.bf16.vlgmr.msra.gmra.mxu0 %vm495_vm1, %v2349_v45  ;;  %3155 = vmatmul.mubr.msk.bf16.vlgmr.msra.gmra.mxu1 %vm495_vm1, %v2349_v45 }
 0xc61   :  { %2448 = vmatpush1.bf16.msra.mxu0 %v4174_v2  ;;  %2489 = vmatpush1.bf16.msra.mxu1 %v4180_v31 }
 0xc62   :  { %2449 = vmatprep.subr.bf16.mxu0 %v4186_v35  ;;  %2490 = vmatprep.subr.bf16.mxu1 %v4192_v17 }
 0xc63   :  { %2467 = vmatprep.mubr.bf16.mxu0 %v4620_v33  ;;  %2508 = vmatprep.mubr.bf16.mxu1 %v4620_v33 }
 0xc65   :  { %2450 = vmatpush1.bf16.msra.mxu0 %v4280_v10  ;;  %2491 = vmatpush1.bf16.msra.mxu1 %v4286_v39 }
 0xc66   :  { %2561 = vmatprep.subr.bf16.mxu0 %v4292_v59  ;;  %2602 = vmatprep.subr.bf16.mxu1 %v4298_v47 }
 0xc68   :  { %3156 = vmatmul.mubr.msk.bf16.vlgmr.msra.gmra.mxu0 %vm495_vm1, %v4432_v58  ;;  %3157 = vmatmul.mubr.msk.bf16.vlgmr.msra.gmra.mxu1 %vm495_vm1, %v4432_v58 }
 0xc69   :  { %2562 = vmatpush1.bf16.msra.mxu0 %v4308_v32  ;;  %2603 = vmatpush1.bf16.msra.mxu1 %v4314_v1 }
 0xc6a   :  { %2563 = vmatprep.subr.bf16.mxu0 %v4320_v51  ;;  %2604 = vmatprep.subr.bf16.mxu1 %v4326_v0 }
 0xc6b   :  { %2581 = vmatprep.mubr.bf16.mxu0 %v4620_v33  ;;  %2622 = vmatprep.mubr.bf16.mxu1 %v4620_v33 }
 0xc6d   :  { %2564 = vmatpush1.bf16.msra.mxu0 %v4334_v12  ;;  %2605 = vmatpush1.bf16.msra.mxu1 %v4340_v29 }
 0xc6e   :  { %2675 = vmatprep.subr.bf16.mxu0 %v4410_v14  ;;  %2716 = vmatprep.subr.bf16.mxu1 %v4413_v21 }
 0xd20   :  { %v2387_v62 = vpop.f32.mrf.mxu0  ;;  %v4498_v58 = vpop.f32.mrf.mxu1 }
 0xd22   :  { %v4500_v27 = vpop.f32.mrf.mxu0  ;;  %v4502_v26 = vpop.f32.mrf.mxu1 }
 0xd24   :  { %v2391_v16 = vpop.f32.mrf.mxu0  ;;  %v2432_v50 = vpop.f32.mrf.mxu1 }
 0xd26   :  { %v2392_v56 = vpop.f32.mrf.mxu0  ;;  %v2433_v18 = vpop.f32.mrf.mxu1 }
 0xd28   :  { %v2469_v49 = vpop.f32.mrf.mxu0  ;;  %v2510_v61 = vpop.f32.mrf.mxu1 }
 0xd29   :  { %v2517_v8 = vadd.f32 %v2469_v49, %v4633_v54  ;;  %v2519_v4 = vadd.f32 %v2510_v61, %v4636_v44 }
 0xd2a   :  { %v2471_v6 = vpop.f32.mrf.mxu0  ;;  %v2512_v7 = vpop.f32.mrf.mxu1 }
 0xd2b   :  { %v3158_v14 = vmul.f32 -1.442695, %v2517_v8  ;;  %v2518_v21 = vadd.f32 %v2471_v6, %v4634_v22  ;;  %v2520_v63 = vadd.f32 %v2512_v7, %v4635_v52 }
 0xd2c   :  { %v2473_v9 = vpop.f32.mrf.mxu0  ;;  %v2514_v15 = vpop.f32.mrf.mxu1 }
 0xd2d   :  { %3445 = vpow2.f32 %v3158_v14  ;;  %v3159_v19 = vmul.f32 -1.442695, %v2518_v21  ;;  %v3160_v11 = vmul.f32 -1.442695, %v2520_v63 }
 0xd2e   :  { %v2474_v24 = vpop.f32.mrf.mxu0  ;;  %v2515_v46 = vpop.f32.mrf.mxu1 }
 0xd2f   :  { %3447 = vpow2.f32 %v3159_v19 }
 0xd30   :  { %3449 = vtanh.f32 %v2519_v4 }
 0xd31   :  { %3451 = vpow2.f32 %v3160_v11 }
 0xd3a   :  { %v3446_v55 = vpop.eup %3445 }
 0xd3b   :  { %v2524_v25 = vadd.f32 1.0, %v3446_v55 }
 0xd3c   :  { %v3448_v48 = vpop.eup %3447 }
 0xd3d   :  { %3453 = vrcp.f32 %v2524_v25  ;;  %v2530_v5 = vadd.f32 1.0, %v3448_v48  ;;  %v3450_v38 = vpop.eup %3449 }
 0xd3e   :  { %v3452_v13 = vpop.eup %3451 }
 0xd3f   :  { %3455 = vrcp.f32 %v2530_v5  ;;  %v2537_v50 = vadd.f32 1.0, %v3452_v13 }
 0xd41   :  { %3457 = vrcp.f32 %v2537_v50 }
 0xd4a   :  { %v3454_v28 = vpop.eup %3453 }
 0xd4b   :  { %v2541_v45 = vmul.f32 %v3454_v28, %v3450_v38 }
 0xd4c   :  { %v3456_v16 = vpop.eup %3455 }
 0xd4d   :  { %v2540_v56 = vmul.f32 %v3456_v16, %v4429_v20 }
 0xd4e   :  { %v3458_v49 = vpop.eup %3457 }
 0xd4f   :  { %v4509_v18 = vadd.f32 %v2541_v45, %v2540_v56 }
 0xd51   :  { %3459 = vtanh.f32 %v4509_v18 }
 0xd5e   :  { %v3460_v61 = vpop.eup %3459 }
 0xd5f   :  { %v2544_v54 = vmul.f32 %v3460_v61, %v3458_v49 }
 0xd61   :  { %v4512_v8 = vpack.c.bf16 %v2544_v54, %v2544_v54  ;;  %v4639_v54 = vld [vmem:[#allocation28_spill] sm:$0xff] }
 0xd63   :  { %3161 = vmatmul.mubr.msk.bf16.vlgmr.msra.gmra.mxu0 %vm495_vm1, %v4512_v8  ;;  %3162 = vmatmul.mubr.msk.bf16.vlgmr.msra.gmra.mxu1 %vm495_vm1, %v4512_v8 }
 0xd64   :  { %2676 = vmatpush1.bf16.msra.mxu0 %v4438_v41  ;;  %2717 = vmatpush1.bf16.msra.mxu1 %v4441_v23 }
 0xd65   :  { %2677 = vmatprep.subr.bf16.mxu0 %v4444_v42  ;;  %2718 = vmatprep.subr.bf16.mxu1 %v4447_v30 }
 0xd66   :  { %2695 = vmatprep.mubr.bf16.mxu0 %v4620_v33  ;;  %2736 = vmatprep.mubr.bf16.mxu1 %v4620_v33 }
 0xd68   :  { %2678 = vmatpush1.bf16.msra.mxu0 %v4452_v37  ;;  %2719 = vmatpush1.bf16.msra.mxu1 %v4455_v3 }
 0xd69   :  { %2757 = vmatprep.subr.bf16.mxu0 %v4248_v60  ;;  %2798 = vmatprep.subr.bf16.mxu1 %v4254_v43 }
 0xe23   :  { %v2583_v20 = vpop.f32.mrf.mxu0  ;;  %v2624_v41 = vpop.f32.mrf.mxu1 }
 0xe24   :  { %v2584_v6 = vadd.f32 %v2583_v20, %v2387_v62  ;;  %v2625_v15 = vadd.f32 %v2624_v41, %v4498_v58  ;;  %v4640_v20 = vld [vmem:[#allocation26_spill] sm:$0xff] }
 0xe25   :  { %v2585_v23 = vpop.f32.mrf.mxu0  ;;  %v2626_v7 = vpop.f32.mrf.mxu1 }
 0xe26   :  { %v2631_v42 = vadd.f32 %v2584_v6, %v4014_v40  ;;  %v2586_v30 = vadd.f32 %v2585_v23, %v4500_v27  ;;  %v2627_v43 = vadd.f32 %v2626_v7, %v4502_v26  ;;  %v2633_v27 = vadd.f32 %v2625_v15, %v4029_v53 }
 0xe27   :  { %v2587_v14 = vpop.f32.mrf.mxu0  ;;  %v2628_v22 = vpop.f32.mrf.mxu1 }
 0xe28   :  { %v3163_v21 = vmul.f32 -1.442695, %v2631_v42  ;;  %v2632_v37 = vadd.f32 %v2586_v30, %v4018_v34  ;;  %v2634_v62 = vadd.f32 %v2627_v43, %v4024_v57 }
 0xe29   :  { %v2588_v9 = vpop.f32.mrf.mxu0  ;;  %v2629_v3 = vpop.f32.mrf.mxu1 }
 0xe2a   :  { %3461 = vpow2.f32 %v3163_v21  ;;  %v3164_v60 = vmul.f32 -1.442695, %v2632_v37  ;;  %v3165_v19 = vmul.f32 -1.442695, %v2634_v62 }
 0xe2c   :  { %3463 = vpow2.f32 %v3164_v60 }
 0xe2d   :  { %3465 = vpow2.f32 %v3165_v19 }
 0xe37   :  { %v3462_v24 = vpop.eup %3461 }
 0xe38   :  { %v2638_v46 = vadd.f32 1.0, %v3462_v24 }
 0xe39   :  { %v3464_v52 = vpop.eup %3463 }
 0xe3a   :  { %3467 = vrcp.f32 %v2638_v46  ;;  %v2644_v63 = vadd.f32 1.0, %v3464_v52  ;;  %v3466_v44 = vpop.eup %3465  ;;  %v3649_v46 = vmov 0.0   ;;  %v3252_v52 = vld [vmem:[#allocation9] sm:$0xff]  }
 0xe3b   :  { %3469 = vtanh.f32 %v2633_v27  ;;  %v2651_v26 = vadd.f32 1.0, %v3466_v44  ;;  %v3251_v27 = vld [vmem:[#allocation9 + $0x8] sm:$0xff]  }
 0xe3c   :  { %3471 = vrcp.f32 %v2644_v63 }
 0xe3d   :  { %3473 = vrcp.f32 %v2651_v26 }
 0xe47   :  { %v3468_v4 = vpop.eup %3467 }
 0xe48   :  { %v3470_v11 = vpop.eup %3469 }
 0xe49   :  { %v3472_v55 = vpop.eup %3471  ;;  %v2655_v25 = vmul.f32 %v3470_v11, %v3468_v4 }
 0xe4a   :  { %v2654_v48 = vmul.f32 %v3472_v55, %v4469_v36  ;;  %v3474_v5 = vpop.eup %3473 }
 0xe4c   :  { %v4536_v58 = vadd.f32 %v2655_v25, %v2654_v48 }
 0xe4e   :  { %3475 = vtanh.f32 %v4536_v58 }
 0xe5b   :  { %v3476_v38 = vpop.eup %3475 }
 0xe5c   :  { %v2658_v13 = vmul.f32 %v3476_v38, %v3474_v5 }
 0xe5e   :  { %v2659_v28 = vpack.c.bf16 %v2658_v13, %v2658_v13 }
 0xe60   :  { %3166 = vmatmul.mubr.msk.bf16.vlgmr.msra.gmra.mxu0 %vm495_vm1, %v2659_v28  ;;  %3167 = vmatmul.mubr.msk.bf16.vlgmr.msra.gmra.mxu1 %vm495_vm1, %v2659_v28 }
 0xe61   :  { %2758 = vmatpush1.bf16.msra.mxu0 %v4174_v2  ;;  %2799 = vmatpush1.bf16.msra.mxu1 %v4180_v31 }
 0xe62   :  { %2759 = vmatprep.subr.bf16.mxu0 %v4186_v35  ;;  %2800 = vmatprep.subr.bf16.mxu1 %v4192_v17 }
 0xe63   :  { %2777 = vmatprep.mubr.bf16.mxu0 %v4620_v33  ;;  %2818 = vmatprep.mubr.bf16.mxu1 %v4620_v33 }
 0xe65   :  { %2760 = vmatpush1.bf16.msra.mxu0 %v4280_v10  ;;  %2801 = vmatpush1.bf16.msra.mxu1 %v4286_v39 }
 0xe66   :  { %2871 = vmatprep.subr.bf16.mxu0 %v4292_v59  ;;  %2912 = vmatprep.subr.bf16.mxu1 %v4298_v47 }
 0xe68   :  { %3168 = vmatmul.mubr.msk.bf16.vlgmr.msra.gmra.mxu0 %vm495_vm1, %v4512_v8  ;;  %3169 = vmatmul.mubr.msk.bf16.vlgmr.msra.gmra.mxu1 %vm495_vm1, %v4512_v8 }
 0xe69   :  { %2872 = vmatpush1.bf16.msra.mxu0 %v4308_v32  ;;  %2913 = vmatpush1.bf16.msra.mxu1 %v4314_v1 }
 0xe6a   :  { %2873 = vmatprep.subr.bf16.mxu0 %v4320_v51  ;;  %2914 = vmatprep.subr.bf16.mxu1 %v4326_v0  ;;  %v4637_v51 = vld [vmem:[#allocation25_spill] sm:$0xff] }
 0xe6b   :  { %2891 = vmatprep.mubr.bf16.mxu0 %v4620_v33  ;;  %2932 = vmatprep.mubr.bf16.mxu1 %v4620_v33 }
 0xe6d   :  { %2874 = vmatpush1.bf16.msra.mxu0 %v4334_v12  ;;  %2915 = vmatpush1.bf16.msra.mxu1 %v4340_v29  ;;  %v4638_v12 = vld [vmem:[#allocation27_spill] sm:$0xff] }
 0xe6e   :  { %3185 = vmatprep.subr.bf16.mxu0 %v3649_v46 }
 0xf20   :  { %v2697_v2 = vpop.f32.mrf.mxu0  ;;  %v4563_v31 = vpop.f32.mrf.mxu1 }
 0xf22   :  { %v2699_v35 = vpop.f32.mrf.mxu0  ;;  %v4565_v17 = vpop.f32.mrf.mxu1 }
 0xf24   :  { %v2701_v10 = vpop.f32.mrf.mxu0  ;;  %v2742_v39 = vpop.f32.mrf.mxu1 }
 0xf26   :  { %v2702_v59 = vpop.f32.mrf.mxu0  ;;  %v2743_v47 = vpop.f32.mrf.mxu1 }
 0xf28   :  { %v2779_v32 = vpop.f32.mrf.mxu0  ;;  %v2820_v1 = vpop.f32.mrf.mxu1 }
 0xf29   :  { %v2827_v0 = vadd.f32 %v2779_v32, %v4637_v51  ;;  %v2829_v41 = vadd.f32 %v2820_v1, %v4640_v20 }
 0xf2a   :  { %v2781_v36 = vpop.f32.mrf.mxu0  ;;  %v2822_v33 = vpop.f32.mrf.mxu1 }
 0xf2b   :  { %v3170_v45 = vmul.f32 -1.442695, %v2827_v0  ;;  %v2828_v16 = vadd.f32 %v2781_v36, %v4638_v12  ;;  %v2830_v8 = vadd.f32 %v2822_v33, %v4639_v54 }
 0xf2c   :  { %v2783_v29 = vpop.f32.mrf.mxu0  ;;  %v2824_v50 = vpop.f32.mrf.mxu1 }
 0xf2d   :  { %3477 = vpow2.f32 %v3170_v45  ;;  %v3171_v56 = vmul.f32 -1.442695, %v2828_v16  ;;  %v3172_v6 = vmul.f32 -1.442695, %v2830_v8  ;;  %v3178_v50 = vld [vmem:[%s4596_s8] ss:$0 sm:$0xff] }
 0xf2e   :  { %v2784_v49 = vpop.f32.mrf.mxu0  ;;  %v2825_v61 = vpop.f32.mrf.mxu1 }
 0xf2f   :  { %3479 = vpow2.f32 %v3171_v56 }
 0xf30   :  { %3481 = vtanh.f32 %v2829_v41 }
 0xf31   :  { %3483 = vpow2.f32 %v3172_v6 }
 0xf3a   :  { %v3478_v23 = vpop.eup %3477 }
 0xf3b   :  { %v2834_v7 = vadd.f32 1.0, %v3478_v23 }
 0xf3c   :  { %v3480_v42 = vpop.eup %3479 }
 0xf3d   :  { %3485 = vrcp.f32 %v2834_v7  ;;  %v2840_v30 = vadd.f32 1.0, %v3480_v42  ;;  %v3482_v14 = vpop.eup %3481 }
 0xf3e   :  { %v3484_v22 = vpop.eup %3483 }
 0xf3f   :  { %3487 = vrcp.f32 %v2840_v30  ;;  %v2847_v3 = vadd.f32 1.0, %v3484_v22 }
 0xf41   :  { %3489 = vrcp.f32 %v2847_v3 }
 0xf4a   :  { %v3486_v21 = vpop.eup %3485 }
 0xf4b   :  { %v2851_v37 = vmul.f32 %v3486_v21, %v3482_v14 }
 0xf4c   :  { %v3488_v9 = vpop.eup %3487 }
 0xf4d   :  { %v2850_v60 = vmul.f32 %v3488_v9, %v4509_v18 }
 0xf4e   :  { %v3490_v62 = vpop.eup %3489 }
 0xf4f   :  { %v2852_v43 = vadd.f32 %v2851_v37, %v2850_v60 }
 0xf51   :  { %3491 = vtanh.f32 %v2852_v43 }
 0xf5e   :  { %v3492_v15 = vpop.eup %3491 }
 0xf5f   :  { %v2854_v19 = vmul.f32 %v3492_v15, %v3490_v62 }
 0xf61   :  { %v2855_v24 = vpack.c.bf16 %v2854_v19, %v2854_v19 }
 0xf63   :  { %3173 = vmatmul.mubr.msk.bf16.vlgmr.msra.gmra.mxu0 %vm495_vm1, %v2855_v24  ;;  %3174 = vmatmul.mubr.msk.bf16.vlgmr.msra.gmra.mxu1 %vm495_vm1, %v2855_v24 }
 0xf64   :  { %3189 = vmatprep.mubr.msk.bf16.mxu0 %vm3650_vm2, %v3649_v46  ;;  %3186 = vmatpush3.bf16.msra.mxu0 %v3251_v27 }
 0xf65   :  { %3187 = vmatprep.subr.bf16.mxu0 %v3649_v46 }
 0xf68   :  { %3188 = vmatpush3.bf16.msra.mxu0 %v3252_v52 }
0x1023   :  { %v2893_v18 = vpop.f32.mrf.mxu0  ;;  %v2934_v63 = vpop.f32.mrf.mxu1 }
0x1024   :  { %v2894_v44 = vadd.f32 %v2893_v18, %v2697_v2  ;;  %v2935_v2 = vadd.f32 %v2934_v63, %v4563_v31 }
0x1025   :  { %v2895_v4 = vpop.f32.mrf.mxu0  ;;  %v2936_v11 = vpop.f32.mrf.mxu1 }
0x1026   :  { %v2941_v55 = vadd.f32 %v2894_v44, %v4014_v40  ;;  %v2896_v26 = vadd.f32 %v2895_v4, %v2699_v35  ;;  %v2937_v39 = vadd.f32 %v2936_v11, %v4565_v17  ;;  %v2943_v40 = vadd.f32 %v2935_v2, %v4029_v53 }
0x1027   :  { %v2897_v25 = vpop.f32.mrf.mxu0  ;;  %v2938_v48 = vpop.f32.mrf.mxu1 }
0x1028   :  { %v3175_v5 = vmul.f32 -1.442695, %v2941_v55  ;;  %v2942_v38 = vadd.f32 %v2896_v26, %v4018_v34  ;;  %v2944_v59 = vadd.f32 %v2937_v39, %v4024_v57 }
0x1029   :  { %v2898_v13 = vpop.f32.mrf.mxu0  ;;  %v2939_v28 = vpop.f32.mrf.mxu1 }
0x102a   :  { %3493 = vpow2.f32 %v3175_v5  ;;  %v3176_v10 = vmul.f32 -1.442695, %v2942_v38  ;;  %v3177_v47 = vmul.f32 -1.442695, %v2944_v59 }
0x102c   :  { %3495 = vpow2.f32 %v3176_v10 }
0x102d   :  { %3497 = vpow2.f32 %v3177_v47 }
0x1037   :  { %v3494_v32 = vpop.eup %3493 }
0x1038   :  { %v2948_v35 = vadd.f32 1.0, %v3494_v32 }
0x1039   :  { %v3496_v1 = vpop.eup %3495 }
0x103a   :  { %3499 = vrcp.f32 %v2948_v35  ;;  %v2954_v34 = vadd.f32 1.0, %v3496_v1  ;;  %v3498_v51 = vpop.eup %3497 }
0x103b   :  { %3501 = vtanh.f32 %v2943_v40  ;;  %v2961_v17 = vadd.f32 1.0, %v3498_v51 }
0x103c   :  { %3503 = vrcp.f32 %v2954_v34 }
0x103d   :  { %3505 = vrcp.f32 %v2961_v17 }
0x1047   :  { %v3500_v0 = vpop.eup %3499 }
0x1048   :  { %v3502_v36 = vpop.eup %3501 }
0x1049   :  { %v3504_v33 = vpop.eup %3503  ;;  %v2965_v45 = vmul.f32 %v3502_v36, %v3500_v0 }
0x104a   :  { %v2964_v57 = vmul.f32 %v3504_v33, %v4536_v58  ;;  %v3506_v12 = vpop.eup %3505 }
0x104c   :  { %v2966_v31 = vadd.f32 %v2965_v45, %v2964_v57 }
0x104e   :  { %3507 = vtanh.f32 %v2966_v31 }
0x105b   :  { %v3508_v53 = vpop.eup %3507 }
0x105c   :  { %v2968_v16 = vmul.f32 %v3508_v53, %v3506_v12 }
0x105e   :  { %v2969_v29 = vpack.c.bf16 %v2968_v16, %v2968_v16 }
0x1060   :  { %3190 = vmatmul.mubr.msk.bf16.vlgmr.msra.gmra.mxu0 %vm495_vm1, %v2969_v29 }
0x1120   :  { %v3030_v56 = vpop.f32.mrf.mxu0 }
0x1121   :  { %v3031_v49 = vadd.f32 %v3178_v50, %v3030_v56 }
0x1122   :  { %v3191_v61 = vpop.f32.mrf.mxu0 }
0x1123   :  { %3036 = vst [vmem:[%s4597_s9] sm:$0xff] %v3031_v49 }
0x1124   :  { %v3033_v58 = vpop.f32.mrf.mxu0 }
0x1126   :  { %v3192_v54 = vpop.f32.mrf.mxu0 }
0x1127   :  { %3041 = vsyncpa [#allocation3], 1 }
0x1128   :  { %3042 = vsyncpa [#allocation5], 1 }
0x1129   :  { %3043 = vsyncpa [#allocation8], 1 }

</bundles_post_ra>
